<compile_context>
chip_gen: v7x
topology: tpu7x:2x2x1
jax: 0.10.0
libtpu: 0.0.40
codegen_flags: <defaults>
</compile_context>

<pallas_src>
from functools import partial

import jax
import jax.numpy as jnp
from jax.experimental import pallas as pl
from jax.experimental.pallas import tpu as pltpu

LANE = 128
ROW_ALIGN = 16                         # block sublane multiple; covers f32 (8) and bf16 (16)
TARGET_BLOCK_BYTES = 4 * 1024 * 1024   # ~4 MiB blocks: 3 arrays x 2 buffers ~= 24 MiB live
VMEM_LIMIT_BYTES = 40 * 1024 * 1024    # > v5e's 16 MiB default scoped limit; <= ~48 MiB
                                       # headroom under v7x's 64 MiB physical VMEM
PALLAS_MIN_BYTES = 1 * 1024 * 1024     # below this, plain jitted XLA add wins (overhead)
SPLIT_MIN_BYTES = 1 * 1024 * 1024      # above this, force >= 2 grid steps (v7x: 2 TCs)
_WIDTHS = (8192, 4096, 2048, 1024, 512, 256, 128)


def _add_kernel(a_ref, x_ref, out_ref):
    # Single output -> 2 HBM reads + 1 write per element (was 2R + 2W).
    # Cast fused here: matches torch's in-place `a += x` (result keeps a's dtype).
    out_ref[...] = a_ref[...] + x_ref[...].astype(a_ref.dtype)


def _choose_layout(n, dtype):
    """Pick a lane-dense 2-D view (rows, width) with width | n, plus block_rows.

    Returns None when no candidate width divides n (ragged -> XLA fallback).
    """
    itemsize = jnp.dtype(dtype).itemsize
    width = None
    for cand in _WIDTHS:
        if n % cand == 0:               # widest lane dim with ZERO padding
            width = cand
            break
    if width is None:
        return None
    rows = n // width

    # ~TARGET_BLOCK_BYTES per block, aligned to the sublane requirement.
    target_rows = max(
        ROW_ALIGN,
        (TARGET_BLOCK_BYTES // (width * itemsize)) // ROW_ALIGN * ROW_ALIGN,
    )
    # v7x has 2 TensorCores; "parallel" only shards across them when the grid
    # has >= 2 steps.  Cap block_rows at ceil(rows/2) (aligned) for slabs > ~1 MiB.
    if n * itemsize > SPLIT_MIN_BYTES and rows > ROW_ALIGN:
        half = -(-rows // 2)
        half_rows = -(-half // ROW_ALIGN) * ROW_ALIGN
        target_rows = min(target_rows, half_rows)

    block_rows = min(rows, target_rows)
    if block_rows != rows:              # full-extent blocks are always legal
        block_rows = max(ROW_ALIGN, block_rows // ROW_ALIGN * ROW_ALIGN)
    return (rows, width), block_rows


def _pallas_accumulate(a2, x2, block_rows):
    rows, width = a2.shape
    spec = pl.BlockSpec((block_rows, width), lambda i: (i, 0))
    return pl.pallas_call(
        _add_kernel,
        out_shape=jax.ShapeDtypeStruct((rows, width), a2.dtype),
        grid=(pl.cdiv(rows, block_rows),),   # ragged last block is masked by Pallas
        in_specs=[spec, spec],
        out_specs=spec,
        compiler_params=pltpu.CompilerParams(
            dimension_semantics=("parallel",),
            vmem_limit_bytes=VMEM_LIMIT_BYTES,
        ),
    )(a2, x2)


@partial(jax.jit, static_argnums=(2, 3))
def _event_step_pallas(a, x, shape2d, block_rows):
    # width | n and inputs are contiguous, so these reshapes are bitcasts:
    # no extra HBM passes outside the kernel.
    a2 = a.reshape(shape2d)
    x2 = x.reshape(shape2d)
    out2 = _pallas_accumulate(a2, x2, block_rows)
    return out2.reshape(a.shape)


@jax.jit
def _event_step_xla(a, x):
    # Small / ragged fast path: XLA's fused elementwise add already hits the
    # HBM roofline and avoids pallas_call launch + degenerate tiny tiles.
    return a + x.astype(a.dtype)


class Accumulator:
    """JAX/Pallas port of eventnn.core.Accumulator (no parameters)."""

    def __init__(self):
        self.event_mode = False
        self.first = True
        self.a = None          # persistent accumulator (stored in x's natural shape)
        self._layout = None    # ((rows, width), block_rows) or None -> XLA fallback

    def reset(self):
        self.first = True
        self.a = None
        self._layout = None

    def eventful(self, mode=True):
        self.event_mode = mode

    def forward(self, x):
        if not self.event_mode:
            return x
        elif self.first:
            return self._forward_flush(x)
        else:
            return self._forward_event(x)

    def _forward_flush(self, x):
        self.first = False
        x = jnp.asarray(x)
        n = int(x.size)
        nbytes = n * jnp.dtype(x.dtype).itemsize
        self._layout = _choose_layout(n, x.dtype) if nbytes >= PALLAS_MIN_BYTES else None
        # JAX arrays are immutable: storing the reference replaces x.clone().
        self.a = x
        # TODO(synk): count_mode counters (count_nonzero -> host ints) not ported.
        return x

    def _forward_event(self, x):
        if self._layout is None:
            # TODO(synk): element counts with no multiple-of-128 factor (ragged
            # tail) and tiny tensors use the XLA add fallback instead of a
            # masked last Pallas block.
            out = _event_step_xla(self.a, x)
        else:
            shape2d, block_rows = self._layout
            out = _event_step_pallas(self.a, x, shape2d, block_rows)
        # The new accumulator and the value handed to the caller are the SAME
        # immutable buffer; later steps only read it, so previously returned
        # results can never be clobbered (no aliasing / donation needed).
        self.a = out
        return out

    __call__ = forward


if __name__ == "__main__":
    key = jax.random.PRNGKey(0)
    keys = jax.random.split(key, 7)

    # --- Pallas path: >= 1 MiB, element count divisible by 128 -------------
    big_shape = (4, 32, 64, 64)          # 524288 f32 elems = 2 MiB -> (64, 8192) slab
    b1 = jax.random.normal(keys[0], big_shape, dtype=jnp.float32)
    b2 = jax.random.normal(keys[1], big_shape, dtype=jnp.float32)
    b3 = jax.random.normal(keys[2], big_shape, dtype=jnp.float32)

    acc = Accumulator()
    acc.eventful(True)
    y1 = acc(b1)                         # flush: returns b1, a = b1
    y2 = acc(b2)                         # event (Pallas): a = b1 + b2
    y3 = acc(b3)                         # event (Pallas): a = b1 + b2 + b3
    jax.block_until_ready((y1, y2, y3))
    assert acc._layout is not None       # the Pallas kernel path actually ran
    assert jnp.array_equal(y1, b1)
    # y2 checked AFTER y3 was computed: earlier results must stay valid.
    assert jnp.allclose(y2, b1 + b2, atol=1e-5)
    assert jnp.allclose(y3, b1 + b2 + b3, atol=1e-5)
    assert y3.shape == big_shape and y3.dtype == jnp.float32

    # --- Non-event mode: identity ------------------------------------------
    small_shape = (2, 4, 16, 16)
    x1 = jax.random.normal(keys[3], small_shape, dtype=jnp.float32)
    x2 = jax.random.normal(keys[4], small_shape, dtype=jnp.float32)
    acc_id = Accumulator()
    assert jnp.array_equal(acc_id(x1), x1)

    # --- Small-tensor fast path (XLA fallback below ~1 MiB) -----------------
    acc_s = Accumulator()
    acc_s.eventful(True)
    acc_s(x1)
    s2 = acc_s(x2)
    jax.block_until_ready(s2)
    assert jnp.allclose(s2, x1 + x2, atol=1e-6)

    # --- Ragged element count (XLA fallback) --------------------------------
    odd_shape = (3, 5, 7)
    z1 = jax.random.normal(keys[5], odd_shape, dtype=jnp.float32)
    z2 = jax.random.normal(keys[6], odd_shape, dtype=jnp.float32)
    acc_o = Accumulator()
    acc_o.eventful(True)
    acc_o(z1)
    w2 = acc_o(z2)
    jax.block_until_ready(w2)
    assert jnp.allclose(w2, z1 + z2, atol=1e-6)
    assert w2.shape == odd_shape

    print("KERNEL_OK")
</pallas_src>

<mosaic_0001>
module attributes {stable_mosaic.version = 11 : i64} {
  func.func @_add_kernel(%arg0: i32, %arg1: memref<32x8192xf32, #tpu.memory_space<vmem>>, %arg2: memref<32x8192xf32, #tpu.memory_space<vmem>>, %arg3: memref<32x8192xf32, #tpu.memory_space<vmem>>) attributes {dimension_semantics = [#tpu.dimension_semantics<parallel>], iteration_bounds = array<i64: 2>, scalar_prefetch = 0 : i64, scratch_operands = 0 : i64, tpu.core_type = #tpu.core_type<tc>, window_params = [{transform_indices = @transform_0, window_bounds = array<i64: 32, 8192>}, {transform_indices = @transform_1, window_bounds = array<i64: 32, 8192>}, {transform_indices = @transform_2, window_bounds = array<i64: 32, 8192>}]} {
    %c0 = arith.constant 0 : index
    %c0_0 = arith.constant 0 : index
    %0 = vector.load %arg1[%c0, %c0_0] : memref<32x8192xf32, #tpu.memory_space<vmem>>, vector<32x8192xf32>
    %c0_1 = arith.constant 0 : index
    %c0_2 = arith.constant 0 : index
    %1 = vector.load %arg2[%c0_1, %c0_2] : memref<32x8192xf32, #tpu.memory_space<vmem>>, vector<32x8192xf32>
    %2 = arith.addf %0, %1 : vector<32x8192xf32>
    %c0_3 = arith.constant 0 : index
    %c0_4 = arith.constant 0 : index
    %3 = vector.load %arg3[%c0_3, %c0_4] : memref<32x8192xf32, #tpu.memory_space<vmem>>, vector<32x8192xf32>
    tpu.vector_store %arg3[%c0_3, %c0_4], %2 {strides = array<i32>} : memref<32x8192xf32, #tpu.memory_space<vmem>>, vector<32x8192xf32>,
    return
  }
  func.func @transform_0(%arg0: i32) -> (i32, i32) {
    %c0_i32 = arith.constant 0 : i32
    %c0_i32_0 = arith.constant 0 : i32
    return %arg0, %c0_i32 : i32, i32
  }
  func.func @transform_1(%arg0: i32) -> (i32, i32) {
    %c0_i32 = arith.constant 0 : i32
    %c0_i32_0 = arith.constant 0 : i32
    return %arg0, %c0_i32 : i32, i32
  }
  func.func @transform_2(%arg0: i32) -> (i32, i32) {
    %c0_i32 = arith.constant 0 : i32
    %c0_i32_0 = arith.constant 0 : i32
    return %arg0, %c0_i32 : i32, i32
  }
}

</mosaic_0001>

<bundles_post_ra>
// kernel: _event_step_pallas.1
= control target key start
LH: loop header
LB: loop body
LE: loop exit
PB: predicated region body
PF: predicated region fallthrough
CT: control target
= control target key end

     0   :  { %s1321_s9 = smov 0   ;;  %s2115_s0 = inlined_call_operand.vmem [shape: f32[64,8192], index: 0, kind: input, shape index: {}]   ;;  %s2116_s1 = inlined_call_operand.vmem [shape: f32[64,8192], index: 1, kind: input, shape index: {}]   ;;  %s2117_s2 = inlined_call_operand.vmem [shape: f32[64,8192], index: 2, kind: output, shape index: {}]  }
   0x1 LB: > { %s1271_s10 = sadd.s32 4294967295, %s1304_s9   ;;  %p1275_p0 = scmp.ge.s32.totalorder %s1304_s9, 1  ;;  %s1304_s9 = sphi %s1321_s9, %s12_s9  }
   0x2   : > { %p126_p1 = scmp.lt.s32.totalorder %s1304_s9, 3 }
   0x4   : > { %p127_p2 = pnand %p1275_p0, %p126_p1 }
   0x5   : > { %s1276_s11 = sshll.u32 (!%p127_p2), %s1271_s10, 2 }
   0x6   : > { %130 = sbr.rel (%p127_p2) target bundleno = 219 (0xdb), region = 28  ;;  %p157_p3 = scmp.lt.s32.totalorder (!%p127_p2), %s1276_s11, 7 }
   0xd   : > { %s2119_s11 = smov (!%p157_p3, %s1276_s11), 7 }
   0xe   : > { %s1287_s12 = sshll.u32 %s2119_s11, 9 }
   0xf   : > { %s1332_s15 = scalar_lea.vmem %s2115_s0, %s1287_s12  ;;  %s1337_s18 = scalar_lea.vmem %s2116_s1, %s1287_s12 }
  0x10   : > { %s1342_s21 = scalar_lea.vmem %s2117_s2, %s1287_s12  ;;  %v177_v0 = vld [vmem:[%s1332_s15] sm:$0xff]  ;;  %v178_v2 = vld [vmem:[%s1332_s15 + $0x8] sm:$0xff]  ;;  %v179_v5 = vld [vmem:[%s1332_s15 + $0x10] sm:$0xff] }
  0x11   : > { %v433_v1 = vld [vmem:[%s1337_s18] sm:$0xff]  ;;  %v434_v4 = vld [vmem:[%s1337_s18 + $0x8] sm:$0xff]  ;;  %v435_v6 = vld [vmem:[%s1337_s18 + $0x10] sm:$0xff] }
  0x12   : > { %v689_v3 = vadd.f32 %v433_v1, %v177_v0  ;;  %v690_v7 = vadd.f32 %v434_v4, %v178_v2  ;;  %v691_v8 = vadd.f32 %v435_v6, %v179_v5  ;;  %v180_v9 = vld [vmem:[%s1332_s15 + $0x18] sm:$0xff]  ;;  %v181_v11 = vld [vmem:[%s1332_s15 + $0x20] sm:$0xff]  ;;  %v182_v14 = vld [vmem:[%s1332_s15 + $0x28] sm:$0xff] }
  0x13   : > { %v436_v10 = vld [vmem:[%s1337_s18 + $0x18] sm:$0xff]  ;;  %v437_v13 = vld [vmem:[%s1337_s18 + $0x20] sm:$0xff]  ;;  %v438_v15 = vld [vmem:[%s1337_s18 + $0x28] sm:$0xff] }
  0x14   : > { %945 = vst [vmem:[%s1342_s21] sm:$0xff] %v689_v3  ;;  %v692_v12 = vadd.f32 %v436_v10, %v180_v9  ;;  %946 = vst [vmem:[%s1342_s21 + $0x8] sm:$0xff] %v690_v7  ;;  %v693_v16 = vadd.f32 %v437_v13, %v181_v11  ;;  %v694_v17 = vadd.f32 %v438_v15, %v182_v14  ;;  %v183_v18 = vld [vmem:[%s1332_s15 + $0x30] sm:$0xff]  ;;  %v184_v20 = vld [vmem:[%s1332_s15 + $0x38] sm:$0xff] }
  0x15   : > { %947 = vst [vmem:[%s1342_s21 + $0x10] sm:$0xff] %v691_v8  ;;  %v439_v19 = vld [vmem:[%s1337_s18 + $0x30] sm:$0xff]  ;;  %v440_v22 = vld [vmem:[%s1337_s18 + $0x38] sm:$0xff]  ;;  %v185_v23 = vld [vmem:[%s1332_s15 + $0x40] sm:$0xff] }
  0x16   : > { %948 = vst [vmem:[%s1342_s21 + $0x18] sm:$0xff] %v692_v12  ;;  %v695_v21 = vadd.f32 %v439_v19, %v183_v18  ;;  %v441_v24 = vld [vmem:[%s1337_s18 + $0x40] sm:$0xff]  ;;  %949 = vst [vmem:[%s1342_s21 + $0x20] sm:$0xff] %v693_v16  ;;  %v696_v25 = vadd.f32 %v440_v22, %v184_v20  ;;  %v186_v27 = vld [vmem:[%s1332_s15 + $0x48] sm:$0xff] }
  0x17   : > { %950 = vst [vmem:[%s1342_s21 + $0x28] sm:$0xff] %v694_v17  ;;  %v697_v26 = vadd.f32 %v441_v24, %v185_v23  ;;  %v442_v28 = vld [vmem:[%s1337_s18 + $0x48] sm:$0xff]  ;;  %v187_v29 = vld [vmem:[%s1332_s15 + $0x50] sm:$0xff]  ;;  %v188_v32 = vld [vmem:[%s1332_s15 + $0x58] sm:$0xff] }
  0x18   : > { %951 = vst [vmem:[%s1342_s21 + $0x30] sm:$0xff] %v695_v21  ;;  %v698_v30 = vadd.f32 %v442_v28, %v186_v27  ;;  %v443_v31 = vld [vmem:[%s1337_s18 + $0x50] sm:$0xff]  ;;  %v444_v33 = vld [vmem:[%s1337_s18 + $0x58] sm:$0xff]  ;;  %952 = vst [vmem:[%s1342_s21 + $0x38] sm:$0xff] %v696_v25 }
  0x19   : > { %953 = vst [vmem:[%s1342_s21 + $0x40] sm:$0xff] %v697_v26  ;;  %v699_v34 = vadd.f32 %v443_v31, %v187_v29  ;;  %v700_v35 = vadd.f32 %v444_v33, %v188_v32  ;;  %v189_v36 = vld [vmem:[%s1332_s15 + $0x60] sm:$0xff]  ;;  %v190_v38 = vld [vmem:[%s1332_s15 + $0x68] sm:$0xff]  ;;  %v191_v41 = vld [vmem:[%s1332_s15 + $0x70] sm:$0xff] }
  0x1a   : > { %v445_v37 = vld [vmem:[%s1337_s18 + $0x60] sm:$0xff]  ;;  %954 = vst [vmem:[%s1342_s21 + $0x48] sm:$0xff] %v698_v30  ;;  %v446_v40 = vld [vmem:[%s1337_s18 + $0x68] sm:$0xff]  ;;  %v447_v42 = vld [vmem:[%s1337_s18 + $0x70] sm:$0xff] }
  0x1b   : > { %v701_v39 = vadd.f32 %v445_v37, %v189_v36  ;;  %955 = vst [vmem:[%s1342_s21 + $0x50] sm:$0xff] %v699_v34  ;;  %956 = vst [vmem:[%s1342_s21 + $0x58] sm:$0xff] %v700_v35  ;;  %v702_v43 = vadd.f32 %v446_v40, %v190_v38  ;;  %v703_v44 = vadd.f32 %v447_v42, %v191_v41  ;;  %v192_v45 = vld [vmem:[%s1332_s15 + $0x78] sm:$0xff]  ;;  %v193_v47 = vld [vmem:[%s1332_s15 + $0x80] sm:$0xff] }
  0x1c   : > { %v448_v46 = vld [vmem:[%s1337_s18 + $0x78] sm:$0xff]  ;;  %v449_v49 = vld [vmem:[%s1337_s18 + $0x80] sm:$0xff]  ;;  %v194_v50 = vld [vmem:[%s1332_s15 + $0x88] sm:$0xff] }
  0x1d   : > { %957 = vst [vmem:[%s1342_s21 + $0x60] sm:$0xff] %v701_v39  ;;  %v704_v48 = vadd.f32 %v448_v46, %v192_v45  ;;  %v450_v51 = vld [vmem:[%s1337_s18 + $0x88] sm:$0xff]  ;;  %958 = vst [vmem:[%s1342_s21 + $0x68] sm:$0xff] %v702_v43  ;;  %v705_v52 = vadd.f32 %v449_v49, %v193_v47  ;;  %v195_v54 = vld [vmem:[%s1332_s15 + $0x90] sm:$0xff] }
  0x1e   : > { %959 = vst [vmem:[%s1342_s21 + $0x70] sm:$0xff] %v703_v44  ;;  %v706_v53 = vadd.f32 %v450_v51, %v194_v50  ;;  %v451_v55 = vld [vmem:[%s1337_s18 + $0x90] sm:$0xff]  ;;  %v196_v56 = vld [vmem:[%s1332_s15 + $0x98] sm:$0xff]  ;;  %v197_v59 = vld [vmem:[%s1332_s15 + $0xa0] sm:$0xff] }
  0x1f   : > { %960 = vst [vmem:[%s1342_s21 + $0x78] sm:$0xff] %v704_v48  ;;  %v707_v57 = vadd.f32 %v451_v55, %v195_v54  ;;  %v452_v58 = vld [vmem:[%s1337_s18 + $0x98] sm:$0xff]  ;;  %v453_v60 = vld [vmem:[%s1337_s18 + $0xa0] sm:$0xff]  ;;  %961 = vst [vmem:[%s1342_s21 + $0x80] sm:$0xff] %v705_v52 }
  0x20   : > { %962 = vst [vmem:[%s1342_s21 + $0x88] sm:$0xff] %v706_v53  ;;  %v708_v61 = vadd.f32 %v452_v58, %v196_v56  ;;  %v709_v62 = vadd.f32 %v453_v60, %v197_v59  ;;  %v198_v63 = vld [vmem:[%s1332_s15 + $0xa8] sm:$0xff]  ;;  %v199_v1 = vld [vmem:[%s1332_s15 + $0xb0] sm:$0xff]  ;;  %v200_v4 = vld [vmem:[%s1332_s15 + $0xb8] sm:$0xff] }
  0x21   : > { %v454_v0 = vld [vmem:[%s1337_s18 + $0xa8] sm:$0xff]  ;;  %963 = vst [vmem:[%s1342_s21 + $0x90] sm:$0xff] %v707_v57  ;;  %v455_v3 = vld [vmem:[%s1337_s18 + $0xb0] sm:$0xff]  ;;  %v456_v5 = vld [vmem:[%s1337_s18 + $0xb8] sm:$0xff] }
  0x22   : > { %v710_v2 = vadd.f32 %v454_v0, %v198_v63  ;;  %964 = vst [vmem:[%s1342_s21 + $0x98] sm:$0xff] %v708_v61  ;;  %965 = vst [vmem:[%s1342_s21 + $0xa0] sm:$0xff] %v709_v62  ;;  %v711_v6 = vadd.f32 %v455_v3, %v199_v1  ;;  %v712_v7 = vadd.f32 %v456_v5, %v200_v4  ;;  %v201_v8 = vld [vmem:[%s1332_s15 + $0xc0] sm:$0xff]  ;;  %v202_v10 = vld [vmem:[%s1332_s15 + $0xc8] sm:$0xff] }
  0x23   : > { %v457_v9 = vld [vmem:[%s1337_s18 + $0xc0] sm:$0xff]  ;;  %v458_v12 = vld [vmem:[%s1337_s18 + $0xc8] sm:$0xff]  ;;  %v203_v13 = vld [vmem:[%s1332_s15 + $0xd0] sm:$0xff] }
  0x24   : > { %966 = vst [vmem:[%s1342_s21 + $0xa8] sm:$0xff] %v710_v2  ;;  %v713_v11 = vadd.f32 %v457_v9, %v201_v8  ;;  %v459_v14 = vld [vmem:[%s1337_s18 + $0xd0] sm:$0xff]  ;;  %967 = vst [vmem:[%s1342_s21 + $0xb0] sm:$0xff] %v711_v6  ;;  %v714_v15 = vadd.f32 %v458_v12, %v202_v10  ;;  %v204_v17 = vld [vmem:[%s1332_s15 + $0xd8] sm:$0xff] }
  0x25   : > { %968 = vst [vmem:[%s1342_s21 + $0xb8] sm:$0xff] %v712_v7  ;;  %v715_v16 = vadd.f32 %v459_v14, %v203_v13  ;;  %v460_v18 = vld [vmem:[%s1337_s18 + $0xd8] sm:$0xff]  ;;  %v205_v19 = vld [vmem:[%s1332_s15 + $0xe0] sm:$0xff]  ;;  %v206_v22 = vld [vmem:[%s1332_s15 + $0xe8] sm:$0xff] }
  0x26   : > { %969 = vst [vmem:[%s1342_s21 + $0xc0] sm:$0xff] %v713_v11  ;;  %v716_v20 = vadd.f32 %v460_v18, %v204_v17  ;;  %v461_v21 = vld [vmem:[%s1337_s18 + $0xe0] sm:$0xff]  ;;  %v462_v23 = vld [vmem:[%s1337_s18 + $0xe8] sm:$0xff]  ;;  %970 = vst [vmem:[%s1342_s21 + $0xc8] sm:$0xff] %v714_v15 }
  0x27   : > { %971 = vst [vmem:[%s1342_s21 + $0xd0] sm:$0xff] %v715_v16  ;;  %v717_v24 = vadd.f32 %v461_v21, %v205_v19  ;;  %v718_v25 = vadd.f32 %v462_v23, %v206_v22  ;;  %v207_v26 = vld [vmem:[%s1332_s15 + $0xf0] sm:$0xff]  ;;  %v208_v28 = vld [vmem:[%s1332_s15 + $0xf8] sm:$0xff]  ;;  %v209_v31 = vld [vmem:[%s1332_s15 + $0x100] sm:$0xff] }
  0x28   : > { %v463_v27 = vld [vmem:[%s1337_s18 + $0xf0] sm:$0xff]  ;;  %972 = vst [vmem:[%s1342_s21 + $0xd8] sm:$0xff] %v716_v20  ;;  %v464_v30 = vld [vmem:[%s1337_s18 + $0xf8] sm:$0xff]  ;;  %v465_v32 = vld [vmem:[%s1337_s18 + $0x100] sm:$0xff] }
  0x29   : > { %v719_v29 = vadd.f32 %v463_v27, %v207_v26  ;;  %973 = vst [vmem:[%s1342_s21 + $0xe0] sm:$0xff] %v717_v24  ;;  %974 = vst [vmem:[%s1342_s21 + $0xe8] sm:$0xff] %v718_v25  ;;  %v720_v33 = vadd.f32 %v464_v30, %v208_v28  ;;  %v721_v34 = vadd.f32 %v465_v32, %v209_v31  ;;  %v210_v35 = vld [vmem:[%s1332_s15 + $0x108] sm:$0xff]  ;;  %v211_v37 = vld [vmem:[%s1332_s15 + $0x110] sm:$0xff] }
  0x2a   : > { %v466_v36 = vld [vmem:[%s1337_s18 + $0x108] sm:$0xff]  ;;  %v467_v39 = vld [vmem:[%s1337_s18 + $0x110] sm:$0xff]  ;;  %v212_v40 = vld [vmem:[%s1332_s15 + $0x118] sm:$0xff] }
  0x2b   : > { %975 = vst [vmem:[%s1342_s21 + $0xf0] sm:$0xff] %v719_v29  ;;  %v722_v38 = vadd.f32 %v466_v36, %v210_v35  ;;  %v468_v41 = vld [vmem:[%s1337_s18 + $0x118] sm:$0xff]  ;;  %976 = vst [vmem:[%s1342_s21 + $0xf8] sm:$0xff] %v720_v33  ;;  %v723_v42 = vadd.f32 %v467_v39, %v211_v37  ;;  %v213_v44 = vld [vmem:[%s1332_s15 + $0x120] sm:$0xff] }
  0x2c   : > { %977 = vst [vmem:[%s1342_s21 + $0x100] sm:$0xff] %v721_v34  ;;  %v724_v43 = vadd.f32 %v468_v41, %v212_v40  ;;  %v469_v45 = vld [vmem:[%s1337_s18 + $0x120] sm:$0xff]  ;;  %v214_v46 = vld [vmem:[%s1332_s15 + $0x128] sm:$0xff]  ;;  %v215_v49 = vld [vmem:[%s1332_s15 + $0x130] sm:$0xff] }
  0x2d   : > { %978 = vst [vmem:[%s1342_s21 + $0x108] sm:$0xff] %v722_v38  ;;  %v725_v47 = vadd.f32 %v469_v45, %v213_v44  ;;  %v470_v48 = vld [vmem:[%s1337_s18 + $0x128] sm:$0xff]  ;;  %v471_v50 = vld [vmem:[%s1337_s18 + $0x130] sm:$0xff]  ;;  %979 = vst [vmem:[%s1342_s21 + $0x110] sm:$0xff] %v723_v42 }
  0x2e   : > { %980 = vst [vmem:[%s1342_s21 + $0x118] sm:$0xff] %v724_v43  ;;  %v726_v51 = vadd.f32 %v470_v48, %v214_v46  ;;  %v727_v52 = vadd.f32 %v471_v50, %v215_v49  ;;  %v216_v53 = vld [vmem:[%s1332_s15 + $0x138] sm:$0xff]  ;;  %v217_v55 = vld [vmem:[%s1332_s15 + $0x140] sm:$0xff]  ;;  %v218_v58 = vld [vmem:[%s1332_s15 + $0x148] sm:$0xff] }
  0x2f   : > { %v472_v54 = vld [vmem:[%s1337_s18 + $0x138] sm:$0xff]  ;;  %981 = vst [vmem:[%s1342_s21 + $0x120] sm:$0xff] %v725_v47  ;;  %v473_v57 = vld [vmem:[%s1337_s18 + $0x140] sm:$0xff]  ;;  %v474_v59 = vld [vmem:[%s1337_s18 + $0x148] sm:$0xff] }
  0x30   : > { %v728_v56 = vadd.f32 %v472_v54, %v216_v53  ;;  %982 = vst [vmem:[%s1342_s21 + $0x128] sm:$0xff] %v726_v51  ;;  %983 = vst [vmem:[%s1342_s21 + $0x130] sm:$0xff] %v727_v52  ;;  %v729_v60 = vadd.f32 %v473_v57, %v217_v55  ;;  %v730_v61 = vadd.f32 %v474_v59, %v218_v58  ;;  %v219_v62 = vld [vmem:[%s1332_s15 + $0x150] sm:$0xff]  ;;  %v220_v0 = vld [vmem:[%s1332_s15 + $0x158] sm:$0xff] }
  0x31   : > { %v475_v63 = vld [vmem:[%s1337_s18 + $0x150] sm:$0xff]  ;;  %v476_v2 = vld [vmem:[%s1337_s18 + $0x158] sm:$0xff]  ;;  %v221_v3 = vld [vmem:[%s1332_s15 + $0x160] sm:$0xff] }
  0x32   : > { %984 = vst [vmem:[%s1342_s21 + $0x138] sm:$0xff] %v728_v56  ;;  %v731_v1 = vadd.f32 %v475_v63, %v219_v62  ;;  %v477_v4 = vld [vmem:[%s1337_s18 + $0x160] sm:$0xff]  ;;  %985 = vst [vmem:[%s1342_s21 + $0x140] sm:$0xff] %v729_v60  ;;  %v732_v5 = vadd.f32 %v476_v2, %v220_v0  ;;  %v222_v7 = vld [vmem:[%s1332_s15 + $0x168] sm:$0xff] }
  0x33   : > { %986 = vst [vmem:[%s1342_s21 + $0x148] sm:$0xff] %v730_v61  ;;  %v733_v6 = vadd.f32 %v477_v4, %v221_v3  ;;  %v478_v8 = vld [vmem:[%s1337_s18 + $0x168] sm:$0xff]  ;;  %v223_v9 = vld [vmem:[%s1332_s15 + $0x170] sm:$0xff]  ;;  %v224_v12 = vld [vmem:[%s1332_s15 + $0x178] sm:$0xff] }
  0x34   : > { %987 = vst [vmem:[%s1342_s21 + $0x150] sm:$0xff] %v731_v1  ;;  %v734_v10 = vadd.f32 %v478_v8, %v222_v7  ;;  %v479_v11 = vld [vmem:[%s1337_s18 + $0x170] sm:$0xff]  ;;  %v480_v13 = vld [vmem:[%s1337_s18 + $0x178] sm:$0xff]  ;;  %988 = vst [vmem:[%s1342_s21 + $0x158] sm:$0xff] %v732_v5 }
  0x35   : > { %989 = vst [vmem:[%s1342_s21 + $0x160] sm:$0xff] %v733_v6  ;;  %v735_v14 = vadd.f32 %v479_v11, %v223_v9  ;;  %v736_v15 = vadd.f32 %v480_v13, %v224_v12  ;;  %v225_v16 = vld [vmem:[%s1332_s15 + $0x180] sm:$0xff]  ;;  %v226_v18 = vld [vmem:[%s1332_s15 + $0x188] sm:$0xff]  ;;  %v227_v21 = vld [vmem:[%s1332_s15 + $0x190] sm:$0xff] }
  0x36   : > { %v481_v17 = vld [vmem:[%s1337_s18 + $0x180] sm:$0xff]  ;;  %990 = vst [vmem:[%s1342_s21 + $0x168] sm:$0xff] %v734_v10  ;;  %v482_v20 = vld [vmem:[%s1337_s18 + $0x188] sm:$0xff]  ;;  %v483_v22 = vld [vmem:[%s1337_s18 + $0x190] sm:$0xff] }
  0x37   : > { %v737_v19 = vadd.f32 %v481_v17, %v225_v16  ;;  %991 = vst [vmem:[%s1342_s21 + $0x170] sm:$0xff] %v735_v14  ;;  %992 = vst [vmem:[%s1342_s21 + $0x178] sm:$0xff] %v736_v15  ;;  %v738_v23 = vadd.f32 %v482_v20, %v226_v18  ;;  %v739_v24 = vadd.f32 %v483_v22, %v227_v21  ;;  %v228_v25 = vld [vmem:[%s1332_s15 + $0x198] sm:$0xff]  ;;  %v229_v27 = vld [vmem:[%s1332_s15 + $0x1a0] sm:$0xff] }
  0x38   : > { %v484_v26 = vld [vmem:[%s1337_s18 + $0x198] sm:$0xff]  ;;  %v485_v29 = vld [vmem:[%s1337_s18 + $0x1a0] sm:$0xff]  ;;  %v230_v30 = vld [vmem:[%s1332_s15 + $0x1a8] sm:$0xff] }
  0x39   : > { %993 = vst [vmem:[%s1342_s21 + $0x180] sm:$0xff] %v737_v19  ;;  %v740_v28 = vadd.f32 %v484_v26, %v228_v25  ;;  %v486_v31 = vld [vmem:[%s1337_s18 + $0x1a8] sm:$0xff]  ;;  %994 = vst [vmem:[%s1342_s21 + $0x188] sm:$0xff] %v738_v23  ;;  %v741_v32 = vadd.f32 %v485_v29, %v229_v27  ;;  %v231_v34 = vld [vmem:[%s1332_s15 + $0x1b0] sm:$0xff] }
  0x3a   : > { %995 = vst [vmem:[%s1342_s21 + $0x190] sm:$0xff] %v739_v24  ;;  %v742_v33 = vadd.f32 %v486_v31, %v230_v30  ;;  %v487_v35 = vld [vmem:[%s1337_s18 + $0x1b0] sm:$0xff]  ;;  %v232_v36 = vld [vmem:[%s1332_s15 + $0x1b8] sm:$0xff]  ;;  %v233_v39 = vld [vmem:[%s1332_s15 + $0x1c0] sm:$0xff] }
  0x3b   : > { %996 = vst [vmem:[%s1342_s21 + $0x198] sm:$0xff] %v740_v28  ;;  %v743_v37 = vadd.f32 %v487_v35, %v231_v34  ;;  %v488_v38 = vld [vmem:[%s1337_s18 + $0x1b8] sm:$0xff]  ;;  %v489_v40 = vld [vmem:[%s1337_s18 + $0x1c0] sm:$0xff]  ;;  %997 = vst [vmem:[%s1342_s21 + $0x1a0] sm:$0xff] %v741_v32 }
  0x3c   : > { %998 = vst [vmem:[%s1342_s21 + $0x1a8] sm:$0xff] %v742_v33  ;;  %v744_v41 = vadd.f32 %v488_v38, %v232_v36  ;;  %v745_v42 = vadd.f32 %v489_v40, %v233_v39  ;;  %v234_v43 = vld [vmem:[%s1332_s15 + $0x1c8] sm:$0xff]  ;;  %v235_v45 = vld [vmem:[%s1332_s15 + $0x1d0] sm:$0xff]  ;;  %v236_v48 = vld [vmem:[%s1332_s15 + $0x1d8] sm:$0xff] }
  0x3d   : > { %v490_v44 = vld [vmem:[%s1337_s18 + $0x1c8] sm:$0xff]  ;;  %999 = vst [vmem:[%s1342_s21 + $0x1b0] sm:$0xff] %v743_v37  ;;  %v491_v47 = vld [vmem:[%s1337_s18 + $0x1d0] sm:$0xff]  ;;  %v492_v49 = vld [vmem:[%s1337_s18 + $0x1d8] sm:$0xff] }
  0x3e   : > { %v746_v46 = vadd.f32 %v490_v44, %v234_v43  ;;  %1000 = vst [vmem:[%s1342_s21 + $0x1b8] sm:$0xff] %v744_v41  ;;  %1001 = vst [vmem:[%s1342_s21 + $0x1c0] sm:$0xff] %v745_v42  ;;  %v747_v50 = vadd.f32 %v491_v47, %v235_v45  ;;  %v748_v51 = vadd.f32 %v492_v49, %v236_v48  ;;  %v237_v52 = vld [vmem:[%s1332_s15 + $0x1e0] sm:$0xff]  ;;  %v238_v54 = vld [vmem:[%s1332_s15 + $0x1e8] sm:$0xff] }
  0x3f   : > { %v493_v53 = vld [vmem:[%s1337_s18 + $0x1e0] sm:$0xff]  ;;  %v494_v56 = vld [vmem:[%s1337_s18 + $0x1e8] sm:$0xff]  ;;  %v239_v57 = vld [vmem:[%s1332_s15 + $0x1f0] sm:$0xff] }
  0x40   : > { %1002 = vst [vmem:[%s1342_s21 + $0x1c8] sm:$0xff] %v746_v46  ;;  %v749_v55 = vadd.f32 %v493_v53, %v237_v52  ;;  %v495_v58 = vld [vmem:[%s1337_s18 + $0x1f0] sm:$0xff]  ;;  %1003 = vst [vmem:[%s1342_s21 + $0x1d0] sm:$0xff] %v747_v50  ;;  %v750_v59 = vadd.f32 %v494_v56, %v238_v54  ;;  %v240_v61 = vld [vmem:[%s1332_s15 + $0x1f8] sm:$0xff] }
  0x41   : > { %1004 = vst [vmem:[%s1342_s21 + $0x1d8] sm:$0xff] %v748_v51  ;;  %v751_v60 = vadd.f32 %v495_v58, %v239_v57  ;;  %v496_v62 = vld [vmem:[%s1337_s18 + $0x1f8] sm:$0xff]  ;;  %v241_v63 = vld [vmem:[%s1332_s15 + $0x200] sm:$0xff]  ;;  %v242_v2 = vld [vmem:[%s1332_s15 + $0x208] sm:$0xff] }
  0x42   : > { %1005 = vst [vmem:[%s1342_s21 + $0x1e0] sm:$0xff] %v749_v55  ;;  %v752_v0 = vadd.f32 %v496_v62, %v240_v61  ;;  %v497_v1 = vld [vmem:[%s1337_s18 + $0x200] sm:$0xff]  ;;  %v498_v3 = vld [vmem:[%s1337_s18 + $0x208] sm:$0xff]  ;;  %1006 = vst [vmem:[%s1342_s21 + $0x1e8] sm:$0xff] %v750_v59 }
  0x43   : > { %1007 = vst [vmem:[%s1342_s21 + $0x1f0] sm:$0xff] %v751_v60  ;;  %v753_v4 = vadd.f32 %v497_v1, %v241_v63  ;;  %v754_v5 = vadd.f32 %v498_v3, %v242_v2  ;;  %v243_v6 = vld [vmem:[%s1332_s15 + $0x210] sm:$0xff]  ;;  %v244_v8 = vld [vmem:[%s1332_s15 + $0x218] sm:$0xff]  ;;  %v245_v11 = vld [vmem:[%s1332_s15 + $0x220] sm:$0xff] }
  0x44   : > { %v499_v7 = vld [vmem:[%s1337_s18 + $0x210] sm:$0xff]  ;;  %1008 = vst [vmem:[%s1342_s21 + $0x1f8] sm:$0xff] %v752_v0  ;;  %v500_v10 = vld [vmem:[%s1337_s18 + $0x218] sm:$0xff]  ;;  %v501_v12 = vld [vmem:[%s1337_s18 + $0x220] sm:$0xff] }
  0x45   : > { %v755_v9 = vadd.f32 %v499_v7, %v243_v6  ;;  %1009 = vst [vmem:[%s1342_s21 + $0x200] sm:$0xff] %v753_v4  ;;  %1010 = vst [vmem:[%s1342_s21 + $0x208] sm:$0xff] %v754_v5  ;;  %v756_v13 = vadd.f32 %v500_v10, %v244_v8  ;;  %v757_v14 = vadd.f32 %v501_v12, %v245_v11  ;;  %v246_v15 = vld [vmem:[%s1332_s15 + $0x228] sm:$0xff]  ;;  %v247_v17 = vld [vmem:[%s1332_s15 + $0x230] sm:$0xff] }
  0x46   : > { %v502_v16 = vld [vmem:[%s1337_s18 + $0x228] sm:$0xff]  ;;  %v503_v19 = vld [vmem:[%s1337_s18 + $0x230] sm:$0xff]  ;;  %v248_v20 = vld [vmem:[%s1332_s15 + $0x238] sm:$0xff] }
  0x47   : > { %1011 = vst [vmem:[%s1342_s21 + $0x210] sm:$0xff] %v755_v9  ;;  %v758_v18 = vadd.f32 %v502_v16, %v246_v15  ;;  %v504_v21 = vld [vmem:[%s1337_s18 + $0x238] sm:$0xff]  ;;  %1012 = vst [vmem:[%s1342_s21 + $0x218] sm:$0xff] %v756_v13  ;;  %v759_v22 = vadd.f32 %v503_v19, %v247_v17  ;;  %v249_v24 = vld [vmem:[%s1332_s15 + $0x240] sm:$0xff] }
  0x48   : > { %1013 = vst [vmem:[%s1342_s21 + $0x220] sm:$0xff] %v757_v14  ;;  %v760_v23 = vadd.f32 %v504_v21, %v248_v20  ;;  %v505_v25 = vld [vmem:[%s1337_s18 + $0x240] sm:$0xff]  ;;  %v250_v26 = vld [vmem:[%s1332_s15 + $0x248] sm:$0xff]  ;;  %v251_v29 = vld [vmem:[%s1332_s15 + $0x250] sm:$0xff] }
  0x49   : > { %1014 = vst [vmem:[%s1342_s21 + $0x228] sm:$0xff] %v758_v18  ;;  %v761_v27 = vadd.f32 %v505_v25, %v249_v24  ;;  %v506_v28 = vld [vmem:[%s1337_s18 + $0x248] sm:$0xff]  ;;  %v507_v30 = vld [vmem:[%s1337_s18 + $0x250] sm:$0xff]  ;;  %1015 = vst [vmem:[%s1342_s21 + $0x230] sm:$0xff] %v759_v22 }
  0x4a   : > { %1016 = vst [vmem:[%s1342_s21 + $0x238] sm:$0xff] %v760_v23  ;;  %v762_v31 = vadd.f32 %v506_v28, %v250_v26  ;;  %v763_v32 = vadd.f32 %v507_v30, %v251_v29  ;;  %v252_v33 = vld [vmem:[%s1332_s15 + $0x258] sm:$0xff]  ;;  %v253_v35 = vld [vmem:[%s1332_s15 + $0x260] sm:$0xff]  ;;  %v254_v38 = vld [vmem:[%s1332_s15 + $0x268] sm:$0xff] }
  0x4b   : > { %v508_v34 = vld [vmem:[%s1337_s18 + $0x258] sm:$0xff]  ;;  %1017 = vst [vmem:[%s1342_s21 + $0x240] sm:$0xff] %v761_v27  ;;  %v509_v37 = vld [vmem:[%s1337_s18 + $0x260] sm:$0xff]  ;;  %v510_v39 = vld [vmem:[%s1337_s18 + $0x268] sm:$0xff] }
  0x4c   : > { %v764_v36 = vadd.f32 %v508_v34, %v252_v33  ;;  %1018 = vst [vmem:[%s1342_s21 + $0x248] sm:$0xff] %v762_v31  ;;  %1019 = vst [vmem:[%s1342_s21 + $0x250] sm:$0xff] %v763_v32  ;;  %v765_v40 = vadd.f32 %v509_v37, %v253_v35  ;;  %v766_v41 = vadd.f32 %v510_v39, %v254_v38  ;;  %v255_v42 = vld [vmem:[%s1332_s15 + $0x270] sm:$0xff]  ;;  %v256_v44 = vld [vmem:[%s1332_s15 + $0x278] sm:$0xff] }
  0x4d   : > { %v511_v43 = vld [vmem:[%s1337_s18 + $0x270] sm:$0xff]  ;;  %v512_v46 = vld [vmem:[%s1337_s18 + $0x278] sm:$0xff]  ;;  %v257_v47 = vld [vmem:[%s1332_s15 + $0x280] sm:$0xff] }
  0x4e   : > { %1020 = vst [vmem:[%s1342_s21 + $0x258] sm:$0xff] %v764_v36  ;;  %v767_v45 = vadd.f32 %v511_v43, %v255_v42  ;;  %v513_v48 = vld [vmem:[%s1337_s18 + $0x280] sm:$0xff]  ;;  %1021 = vst [vmem:[%s1342_s21 + $0x260] sm:$0xff] %v765_v40  ;;  %v768_v49 = vadd.f32 %v512_v46, %v256_v44  ;;  %v258_v51 = vld [vmem:[%s1332_s15 + $0x288] sm:$0xff] }
  0x4f   : > { %1022 = vst [vmem:[%s1342_s21 + $0x268] sm:$0xff] %v766_v41  ;;  %v769_v50 = vadd.f32 %v513_v48, %v257_v47  ;;  %v514_v52 = vld [vmem:[%s1337_s18 + $0x288] sm:$0xff]  ;;  %v259_v53 = vld [vmem:[%s1332_s15 + $0x290] sm:$0xff]  ;;  %v260_v56 = vld [vmem:[%s1332_s15 + $0x298] sm:$0xff] }
  0x50   : > { %1023 = vst [vmem:[%s1342_s21 + $0x270] sm:$0xff] %v767_v45  ;;  %v770_v54 = vadd.f32 %v514_v52, %v258_v51  ;;  %v515_v55 = vld [vmem:[%s1337_s18 + $0x290] sm:$0xff]  ;;  %v516_v57 = vld [vmem:[%s1337_s18 + $0x298] sm:$0xff]  ;;  %1024 = vst [vmem:[%s1342_s21 + $0x278] sm:$0xff] %v768_v49 }
  0x51   : > { %1025 = vst [vmem:[%s1342_s21 + $0x280] sm:$0xff] %v769_v50  ;;  %v771_v58 = vadd.f32 %v515_v55, %v259_v53  ;;  %v772_v59 = vadd.f32 %v516_v57, %v260_v56  ;;  %v261_v60 = vld [vmem:[%s1332_s15 + $0x2a0] sm:$0xff]  ;;  %v262_v62 = vld [vmem:[%s1332_s15 + $0x2a8] sm:$0xff]  ;;  %v263_v1 = vld [vmem:[%s1332_s15 + $0x2b0] sm:$0xff] }
  0x52   : > { %v517_v61 = vld [vmem:[%s1337_s18 + $0x2a0] sm:$0xff]  ;;  %1026 = vst [vmem:[%s1342_s21 + $0x288] sm:$0xff] %v770_v54  ;;  %v518_v0 = vld [vmem:[%s1337_s18 + $0x2a8] sm:$0xff]  ;;  %v519_v2 = vld [vmem:[%s1337_s18 + $0x2b0] sm:$0xff] }
  0x53   : > { %v773_v63 = vadd.f32 %v517_v61, %v261_v60  ;;  %1027 = vst [vmem:[%s1342_s21 + $0x290] sm:$0xff] %v771_v58  ;;  %1028 = vst [vmem:[%s1342_s21 + $0x298] sm:$0xff] %v772_v59  ;;  %v774_v3 = vadd.f32 %v518_v0, %v262_v62  ;;  %v775_v4 = vadd.f32 %v519_v2, %v263_v1  ;;  %v264_v5 = vld [vmem:[%s1332_s15 + $0x2b8] sm:$0xff]  ;;  %v265_v7 = vld [vmem:[%s1332_s15 + $0x2c0] sm:$0xff] }
  0x54   : > { %v520_v6 = vld [vmem:[%s1337_s18 + $0x2b8] sm:$0xff]  ;;  %v521_v9 = vld [vmem:[%s1337_s18 + $0x2c0] sm:$0xff]  ;;  %v266_v10 = vld [vmem:[%s1332_s15 + $0x2c8] sm:$0xff] }
  0x55   : > { %1029 = vst [vmem:[%s1342_s21 + $0x2a0] sm:$0xff] %v773_v63  ;;  %v776_v8 = vadd.f32 %v520_v6, %v264_v5  ;;  %v522_v11 = vld [vmem:[%s1337_s18 + $0x2c8] sm:$0xff]  ;;  %1030 = vst [vmem:[%s1342_s21 + $0x2a8] sm:$0xff] %v774_v3  ;;  %v777_v12 = vadd.f32 %v521_v9, %v265_v7  ;;  %v267_v14 = vld [vmem:[%s1332_s15 + $0x2d0] sm:$0xff] }
  0x56   : > { %1031 = vst [vmem:[%s1342_s21 + $0x2b0] sm:$0xff] %v775_v4  ;;  %v778_v13 = vadd.f32 %v522_v11, %v266_v10  ;;  %v523_v15 = vld [vmem:[%s1337_s18 + $0x2d0] sm:$0xff]  ;;  %v268_v16 = vld [vmem:[%s1332_s15 + $0x2d8] sm:$0xff]  ;;  %v269_v19 = vld [vmem:[%s1332_s15 + $0x2e0] sm:$0xff] }
  0x57   : > { %1032 = vst [vmem:[%s1342_s21 + $0x2b8] sm:$0xff] %v776_v8  ;;  %v779_v17 = vadd.f32 %v523_v15, %v267_v14  ;;  %v524_v18 = vld [vmem:[%s1337_s18 + $0x2d8] sm:$0xff]  ;;  %v525_v20 = vld [vmem:[%s1337_s18 + $0x2e0] sm:$0xff]  ;;  %1033 = vst [vmem:[%s1342_s21 + $0x2c0] sm:$0xff] %v777_v12 }
  0x58   : > { %1034 = vst [vmem:[%s1342_s21 + $0x2c8] sm:$0xff] %v778_v13  ;;  %v780_v21 = vadd.f32 %v524_v18, %v268_v16  ;;  %v781_v22 = vadd.f32 %v525_v20, %v269_v19  ;;  %v270_v23 = vld [vmem:[%s1332_s15 + $0x2e8] sm:$0xff]  ;;  %v271_v25 = vld [vmem:[%s1332_s15 + $0x2f0] sm:$0xff]  ;;  %v272_v28 = vld [vmem:[%s1332_s15 + $0x2f8] sm:$0xff] }
  0x59   : > { %v526_v24 = vld [vmem:[%s1337_s18 + $0x2e8] sm:$0xff]  ;;  %1035 = vst [vmem:[%s1342_s21 + $0x2d0] sm:$0xff] %v779_v17  ;;  %v527_v27 = vld [vmem:[%s1337_s18 + $0x2f0] sm:$0xff]  ;;  %v528_v29 = vld [vmem:[%s1337_s18 + $0x2f8] sm:$0xff] }
  0x5a   : > { %v782_v26 = vadd.f32 %v526_v24, %v270_v23  ;;  %1036 = vst [vmem:[%s1342_s21 + $0x2d8] sm:$0xff] %v780_v21  ;;  %1037 = vst [vmem:[%s1342_s21 + $0x2e0] sm:$0xff] %v781_v22  ;;  %v783_v30 = vadd.f32 %v527_v27, %v271_v25  ;;  %v784_v31 = vadd.f32 %v528_v29, %v272_v28  ;;  %v273_v32 = vld [vmem:[%s1332_s15 + $0x300] sm:$0xff]  ;;  %v274_v34 = vld [vmem:[%s1332_s15 + $0x308] sm:$0xff] }
  0x5b   : > { %v529_v33 = vld [vmem:[%s1337_s18 + $0x300] sm:$0xff]  ;;  %v530_v36 = vld [vmem:[%s1337_s18 + $0x308] sm:$0xff]  ;;  %v275_v37 = vld [vmem:[%s1332_s15 + $0x310] sm:$0xff] }
  0x5c   : > { %1038 = vst [vmem:[%s1342_s21 + $0x2e8] sm:$0xff] %v782_v26  ;;  %v785_v35 = vadd.f32 %v529_v33, %v273_v32  ;;  %v531_v38 = vld [vmem:[%s1337_s18 + $0x310] sm:$0xff]  ;;  %1039 = vst [vmem:[%s1342_s21 + $0x2f0] sm:$0xff] %v783_v30  ;;  %v786_v39 = vadd.f32 %v530_v36, %v274_v34  ;;  %v276_v41 = vld [vmem:[%s1332_s15 + $0x318] sm:$0xff] }
  0x5d   : > { %1040 = vst [vmem:[%s1342_s21 + $0x2f8] sm:$0xff] %v784_v31  ;;  %v787_v40 = vadd.f32 %v531_v38, %v275_v37  ;;  %v532_v42 = vld [vmem:[%s1337_s18 + $0x318] sm:$0xff]  ;;  %v277_v43 = vld [vmem:[%s1332_s15 + $0x320] sm:$0xff]  ;;  %v278_v46 = vld [vmem:[%s1332_s15 + $0x328] sm:$0xff] }
  0x5e   : > { %1041 = vst [vmem:[%s1342_s21 + $0x300] sm:$0xff] %v785_v35  ;;  %v788_v44 = vadd.f32 %v532_v42, %v276_v41  ;;  %v533_v45 = vld [vmem:[%s1337_s18 + $0x320] sm:$0xff]  ;;  %v534_v47 = vld [vmem:[%s1337_s18 + $0x328] sm:$0xff]  ;;  %1042 = vst [vmem:[%s1342_s21 + $0x308] sm:$0xff] %v786_v39 }
  0x5f   : > { %1043 = vst [vmem:[%s1342_s21 + $0x310] sm:$0xff] %v787_v40  ;;  %v789_v48 = vadd.f32 %v533_v45, %v277_v43  ;;  %v790_v49 = vadd.f32 %v534_v47, %v278_v46  ;;  %v279_v50 = vld [vmem:[%s1332_s15 + $0x330] sm:$0xff]  ;;  %v280_v52 = vld [vmem:[%s1332_s15 + $0x338] sm:$0xff]  ;;  %v281_v55 = vld [vmem:[%s1332_s15 + $0x340] sm:$0xff] }
  0x60   : > { %v535_v51 = vld [vmem:[%s1337_s18 + $0x330] sm:$0xff]  ;;  %1044 = vst [vmem:[%s1342_s21 + $0x318] sm:$0xff] %v788_v44  ;;  %v536_v54 = vld [vmem:[%s1337_s18 + $0x338] sm:$0xff]  ;;  %v537_v56 = vld [vmem:[%s1337_s18 + $0x340] sm:$0xff] }
  0x61   : > { %v791_v53 = vadd.f32 %v535_v51, %v279_v50  ;;  %1045 = vst [vmem:[%s1342_s21 + $0x320] sm:$0xff] %v789_v48  ;;  %1046 = vst [vmem:[%s1342_s21 + $0x328] sm:$0xff] %v790_v49  ;;  %v792_v57 = vadd.f32 %v536_v54, %v280_v52  ;;  %v793_v58 = vadd.f32 %v537_v56, %v281_v55  ;;  %v282_v59 = vld [vmem:[%s1332_s15 + $0x348] sm:$0xff]  ;;  %v283_v61 = vld [vmem:[%s1332_s15 + $0x350] sm:$0xff] }
  0x62   : > { %v538_v60 = vld [vmem:[%s1337_s18 + $0x348] sm:$0xff]  ;;  %v539_v63 = vld [vmem:[%s1337_s18 + $0x350] sm:$0xff]  ;;  %v284_v0 = vld [vmem:[%s1332_s15 + $0x358] sm:$0xff] }
  0x63   : > { %1047 = vst [vmem:[%s1342_s21 + $0x330] sm:$0xff] %v791_v53  ;;  %v794_v62 = vadd.f32 %v538_v60, %v282_v59  ;;  %v540_v1 = vld [vmem:[%s1337_s18 + $0x358] sm:$0xff]  ;;  %1048 = vst [vmem:[%s1342_s21 + $0x338] sm:$0xff] %v792_v57  ;;  %v795_v2 = vadd.f32 %v539_v63, %v283_v61  ;;  %v285_v4 = vld [vmem:[%s1332_s15 + $0x360] sm:$0xff] }
  0x64   : > { %1049 = vst [vmem:[%s1342_s21 + $0x340] sm:$0xff] %v793_v58  ;;  %v796_v3 = vadd.f32 %v540_v1, %v284_v0  ;;  %v541_v5 = vld [vmem:[%s1337_s18 + $0x360] sm:$0xff]  ;;  %v286_v6 = vld [vmem:[%s1332_s15 + $0x368] sm:$0xff]  ;;  %v287_v9 = vld [vmem:[%s1332_s15 + $0x370] sm:$0xff] }
  0x65   : > { %1050 = vst [vmem:[%s1342_s21 + $0x348] sm:$0xff] %v794_v62  ;;  %v797_v7 = vadd.f32 %v541_v5, %v285_v4  ;;  %v542_v8 = vld [vmem:[%s1337_s18 + $0x368] sm:$0xff]  ;;  %v543_v10 = vld [vmem:[%s1337_s18 + $0x370] sm:$0xff]  ;;  %1051 = vst [vmem:[%s1342_s21 + $0x350] sm:$0xff] %v795_v2 }
  0x66   : > { %1052 = vst [vmem:[%s1342_s21 + $0x358] sm:$0xff] %v796_v3  ;;  %v798_v11 = vadd.f32 %v542_v8, %v286_v6  ;;  %v799_v12 = vadd.f32 %v543_v10, %v287_v9  ;;  %v288_v13 = vld [vmem:[%s1332_s15 + $0x378] sm:$0xff]  ;;  %v289_v15 = vld [vmem:[%s1332_s15 + $0x380] sm:$0xff]  ;;  %v290_v18 = vld [vmem:[%s1332_s15 + $0x388] sm:$0xff] }
  0x67   : > { %v544_v14 = vld [vmem:[%s1337_s18 + $0x378] sm:$0xff]  ;;  %1053 = vst [vmem:[%s1342_s21 + $0x360] sm:$0xff] %v797_v7  ;;  %v545_v17 = vld [vmem:[%s1337_s18 + $0x380] sm:$0xff]  ;;  %v546_v19 = vld [vmem:[%s1337_s18 + $0x388] sm:$0xff] }
  0x68   : > { %v800_v16 = vadd.f32 %v544_v14, %v288_v13  ;;  %1054 = vst [vmem:[%s1342_s21 + $0x368] sm:$0xff] %v798_v11  ;;  %1055 = vst [vmem:[%s1342_s21 + $0x370] sm:$0xff] %v799_v12  ;;  %v801_v20 = vadd.f32 %v545_v17, %v289_v15  ;;  %v802_v21 = vadd.f32 %v546_v19, %v290_v18  ;;  %v291_v22 = vld [vmem:[%s1332_s15 + $0x390] sm:$0xff]  ;;  %v292_v24 = vld [vmem:[%s1332_s15 + $0x398] sm:$0xff] }
  0x69   : > { %v547_v23 = vld [vmem:[%s1337_s18 + $0x390] sm:$0xff]  ;;  %v548_v26 = vld [vmem:[%s1337_s18 + $0x398] sm:$0xff]  ;;  %v293_v27 = vld [vmem:[%s1332_s15 + $0x3a0] sm:$0xff] }
  0x6a   : > { %1056 = vst [vmem:[%s1342_s21 + $0x378] sm:$0xff] %v800_v16  ;;  %v803_v25 = vadd.f32 %v547_v23, %v291_v22  ;;  %v549_v28 = vld [vmem:[%s1337_s18 + $0x3a0] sm:$0xff]  ;;  %1057 = vst [vmem:[%s1342_s21 + $0x380] sm:$0xff] %v801_v20  ;;  %v804_v29 = vadd.f32 %v548_v26, %v292_v24  ;;  %v294_v31 = vld [vmem:[%s1332_s15 + $0x3a8] sm:$0xff] }
  0x6b   : > { %1058 = vst [vmem:[%s1342_s21 + $0x388] sm:$0xff] %v802_v21  ;;  %v805_v30 = vadd.f32 %v549_v28, %v293_v27  ;;  %v550_v32 = vld [vmem:[%s1337_s18 + $0x3a8] sm:$0xff]  ;;  %v295_v33 = vld [vmem:[%s1332_s15 + $0x3b0] sm:$0xff]  ;;  %v296_v36 = vld [vmem:[%s1332_s15 + $0x3b8] sm:$0xff] }
  0x6c   : > { %1059 = vst [vmem:[%s1342_s21 + $0x390] sm:$0xff] %v803_v25  ;;  %v806_v34 = vadd.f32 %v550_v32, %v294_v31  ;;  %v551_v35 = vld [vmem:[%s1337_s18 + $0x3b0] sm:$0xff]  ;;  %v552_v37 = vld [vmem:[%s1337_s18 + $0x3b8] sm:$0xff]  ;;  %1060 = vst [vmem:[%s1342_s21 + $0x398] sm:$0xff] %v804_v29 }
  0x6d   : > { %1061 = vst [vmem:[%s1342_s21 + $0x3a0] sm:$0xff] %v805_v30  ;;  %v807_v38 = vadd.f32 %v551_v35, %v295_v33  ;;  %v808_v39 = vadd.f32 %v552_v37, %v296_v36  ;;  %v297_v40 = vld [vmem:[%s1332_s15 + $0x3c0] sm:$0xff]  ;;  %v298_v42 = vld [vmem:[%s1332_s15 + $0x3c8] sm:$0xff]  ;;  %v299_v45 = vld [vmem:[%s1332_s15 + $0x3d0] sm:$0xff] }
  0x6e   : > { %v553_v41 = vld [vmem:[%s1337_s18 + $0x3c0] sm:$0xff]  ;;  %1062 = vst [vmem:[%s1342_s21 + $0x3a8] sm:$0xff] %v806_v34  ;;  %v554_v44 = vld [vmem:[%s1337_s18 + $0x3c8] sm:$0xff]  ;;  %v555_v46 = vld [vmem:[%s1337_s18 + $0x3d0] sm:$0xff] }
  0x6f   : > { %v809_v43 = vadd.f32 %v553_v41, %v297_v40  ;;  %1063 = vst [vmem:[%s1342_s21 + $0x3b0] sm:$0xff] %v807_v38  ;;  %1064 = vst [vmem:[%s1342_s21 + $0x3b8] sm:$0xff] %v808_v39  ;;  %v810_v47 = vadd.f32 %v554_v44, %v298_v42  ;;  %v811_v48 = vadd.f32 %v555_v46, %v299_v45  ;;  %v300_v49 = vld [vmem:[%s1332_s15 + $0x3d8] sm:$0xff]  ;;  %v301_v51 = vld [vmem:[%s1332_s15 + $0x3e0] sm:$0xff] }
  0x70   : > { %v556_v50 = vld [vmem:[%s1337_s18 + $0x3d8] sm:$0xff]  ;;  %v557_v53 = vld [vmem:[%s1337_s18 + $0x3e0] sm:$0xff]  ;;  %v302_v54 = vld [vmem:[%s1332_s15 + $0x3e8] sm:$0xff] }
  0x71   : > { %1065 = vst [vmem:[%s1342_s21 + $0x3c0] sm:$0xff] %v809_v43  ;;  %v812_v52 = vadd.f32 %v556_v50, %v300_v49  ;;  %v558_v55 = vld [vmem:[%s1337_s18 + $0x3e8] sm:$0xff]  ;;  %1066 = vst [vmem:[%s1342_s21 + $0x3c8] sm:$0xff] %v810_v47  ;;  %v813_v56 = vadd.f32 %v557_v53, %v301_v51  ;;  %v303_v58 = vld [vmem:[%s1332_s15 + $0x3f0] sm:$0xff] }
  0x72   : > { %1067 = vst [vmem:[%s1342_s21 + $0x3d0] sm:$0xff] %v811_v48  ;;  %v814_v57 = vadd.f32 %v558_v55, %v302_v54  ;;  %v559_v59 = vld [vmem:[%s1337_s18 + $0x3f0] sm:$0xff]  ;;  %v304_v60 = vld [vmem:[%s1332_s15 + $0x3f8] sm:$0xff]  ;;  %v305_v63 = vld [vmem:[%s1332_s15 + $0x400] sm:$0xff] }
  0x73   : > { %1068 = vst [vmem:[%s1342_s21 + $0x3d8] sm:$0xff] %v812_v52  ;;  %v815_v61 = vadd.f32 %v559_v59, %v303_v58  ;;  %v560_v62 = vld [vmem:[%s1337_s18 + $0x3f8] sm:$0xff]  ;;  %v561_v0 = vld [vmem:[%s1337_s18 + $0x400] sm:$0xff]  ;;  %1069 = vst [vmem:[%s1342_s21 + $0x3e0] sm:$0xff] %v813_v56 }
  0x74   : > { %1070 = vst [vmem:[%s1342_s21 + $0x3e8] sm:$0xff] %v814_v57  ;;  %v816_v1 = vadd.f32 %v560_v62, %v304_v60  ;;  %v817_v2 = vadd.f32 %v561_v0, %v305_v63  ;;  %v306_v3 = vld [vmem:[%s1332_s15 + $0x408] sm:$0xff]  ;;  %v307_v5 = vld [vmem:[%s1332_s15 + $0x410] sm:$0xff]  ;;  %v308_v8 = vld [vmem:[%s1332_s15 + $0x418] sm:$0xff] }
  0x75   : > { %v562_v4 = vld [vmem:[%s1337_s18 + $0x408] sm:$0xff]  ;;  %1071 = vst [vmem:[%s1342_s21 + $0x3f0] sm:$0xff] %v815_v61  ;;  %v563_v7 = vld [vmem:[%s1337_s18 + $0x410] sm:$0xff]  ;;  %v564_v9 = vld [vmem:[%s1337_s18 + $0x418] sm:$0xff] }
  0x76   : > { %v818_v6 = vadd.f32 %v562_v4, %v306_v3  ;;  %1072 = vst [vmem:[%s1342_s21 + $0x3f8] sm:$0xff] %v816_v1  ;;  %1073 = vst [vmem:[%s1342_s21 + $0x400] sm:$0xff] %v817_v2  ;;  %v819_v10 = vadd.f32 %v563_v7, %v307_v5  ;;  %v820_v11 = vadd.f32 %v564_v9, %v308_v8  ;;  %v309_v12 = vld [vmem:[%s1332_s15 + $0x420] sm:$0xff]  ;;  %v310_v14 = vld [vmem:[%s1332_s15 + $0x428] sm:$0xff] }
  0x77   : > { %v565_v13 = vld [vmem:[%s1337_s18 + $0x420] sm:$0xff]  ;;  %v566_v16 = vld [vmem:[%s1337_s18 + $0x428] sm:$0xff]  ;;  %v311_v17 = vld [vmem:[%s1332_s15 + $0x430] sm:$0xff] }
  0x78   : > { %1074 = vst [vmem:[%s1342_s21 + $0x408] sm:$0xff] %v818_v6  ;;  %v821_v15 = vadd.f32 %v565_v13, %v309_v12  ;;  %v567_v18 = vld [vmem:[%s1337_s18 + $0x430] sm:$0xff]  ;;  %1075 = vst [vmem:[%s1342_s21 + $0x410] sm:$0xff] %v819_v10  ;;  %v822_v19 = vadd.f32 %v566_v16, %v310_v14  ;;  %v312_v21 = vld [vmem:[%s1332_s15 + $0x438] sm:$0xff] }
  0x79   : > { %1076 = vst [vmem:[%s1342_s21 + $0x418] sm:$0xff] %v820_v11  ;;  %v823_v20 = vadd.f32 %v567_v18, %v311_v17  ;;  %v568_v22 = vld [vmem:[%s1337_s18 + $0x438] sm:$0xff]  ;;  %v313_v23 = vld [vmem:[%s1332_s15 + $0x440] sm:$0xff]  ;;  %v314_v26 = vld [vmem:[%s1332_s15 + $0x448] sm:$0xff] }
  0x7a   : > { %1077 = vst [vmem:[%s1342_s21 + $0x420] sm:$0xff] %v821_v15  ;;  %v824_v24 = vadd.f32 %v568_v22, %v312_v21  ;;  %v569_v25 = vld [vmem:[%s1337_s18 + $0x440] sm:$0xff]  ;;  %v570_v27 = vld [vmem:[%s1337_s18 + $0x448] sm:$0xff]  ;;  %1078 = vst [vmem:[%s1342_s21 + $0x428] sm:$0xff] %v822_v19 }
  0x7b   : > { %1079 = vst [vmem:[%s1342_s21 + $0x430] sm:$0xff] %v823_v20  ;;  %v825_v28 = vadd.f32 %v569_v25, %v313_v23  ;;  %v826_v29 = vadd.f32 %v570_v27, %v314_v26  ;;  %v315_v30 = vld [vmem:[%s1332_s15 + $0x450] sm:$0xff]  ;;  %v316_v32 = vld [vmem:[%s1332_s15 + $0x458] sm:$0xff]  ;;  %v317_v35 = vld [vmem:[%s1332_s15 + $0x460] sm:$0xff] }
  0x7c   : > { %v571_v31 = vld [vmem:[%s1337_s18 + $0x450] sm:$0xff]  ;;  %1080 = vst [vmem:[%s1342_s21 + $0x438] sm:$0xff] %v824_v24  ;;  %v572_v34 = vld [vmem:[%s1337_s18 + $0x458] sm:$0xff]  ;;  %v573_v36 = vld [vmem:[%s1337_s18 + $0x460] sm:$0xff] }
  0x7d   : > { %v827_v33 = vadd.f32 %v571_v31, %v315_v30  ;;  %1081 = vst [vmem:[%s1342_s21 + $0x440] sm:$0xff] %v825_v28  ;;  %1082 = vst [vmem:[%s1342_s21 + $0x448] sm:$0xff] %v826_v29  ;;  %v828_v37 = vadd.f32 %v572_v34, %v316_v32  ;;  %v829_v38 = vadd.f32 %v573_v36, %v317_v35  ;;  %v318_v39 = vld [vmem:[%s1332_s15 + $0x468] sm:$0xff]  ;;  %v319_v41 = vld [vmem:[%s1332_s15 + $0x470] sm:$0xff] }
  0x7e   : > { %v574_v40 = vld [vmem:[%s1337_s18 + $0x468] sm:$0xff]  ;;  %v575_v43 = vld [vmem:[%s1337_s18 + $0x470] sm:$0xff]  ;;  %v320_v44 = vld [vmem:[%s1332_s15 + $0x478] sm:$0xff] }
  0x7f   : > { %1083 = vst [vmem:[%s1342_s21 + $0x450] sm:$0xff] %v827_v33  ;;  %v830_v42 = vadd.f32 %v574_v40, %v318_v39  ;;  %v576_v45 = vld [vmem:[%s1337_s18 + $0x478] sm:$0xff]  ;;  %1084 = vst [vmem:[%s1342_s21 + $0x458] sm:$0xff] %v828_v37  ;;  %v831_v46 = vadd.f32 %v575_v43, %v319_v41  ;;  %v321_v48 = vld [vmem:[%s1332_s15 + $0x480] sm:$0xff] }
  0x80   : > { %1085 = vst [vmem:[%s1342_s21 + $0x460] sm:$0xff] %v829_v38  ;;  %v832_v47 = vadd.f32 %v576_v45, %v320_v44  ;;  %v577_v49 = vld [vmem:[%s1337_s18 + $0x480] sm:$0xff]  ;;  %v322_v50 = vld [vmem:[%s1332_s15 + $0x488] sm:$0xff]  ;;  %v323_v53 = vld [vmem:[%s1332_s15 + $0x490] sm:$0xff] }
  0x81   : > { %1086 = vst [vmem:[%s1342_s21 + $0x468] sm:$0xff] %v830_v42  ;;  %v833_v51 = vadd.f32 %v577_v49, %v321_v48  ;;  %v578_v52 = vld [vmem:[%s1337_s18 + $0x488] sm:$0xff]  ;;  %v579_v54 = vld [vmem:[%s1337_s18 + $0x490] sm:$0xff]  ;;  %1087 = vst [vmem:[%s1342_s21 + $0x470] sm:$0xff] %v831_v46 }
  0x82   : > { %1088 = vst [vmem:[%s1342_s21 + $0x478] sm:$0xff] %v832_v47  ;;  %v834_v55 = vadd.f32 %v578_v52, %v322_v50  ;;  %v835_v56 = vadd.f32 %v579_v54, %v323_v53  ;;  %v324_v57 = vld [vmem:[%s1332_s15 + $0x498] sm:$0xff]  ;;  %v325_v59 = vld [vmem:[%s1332_s15 + $0x4a0] sm:$0xff]  ;;  %v326_v62 = vld [vmem:[%s1332_s15 + $0x4a8] sm:$0xff] }
  0x83   : > { %v580_v58 = vld [vmem:[%s1337_s18 + $0x498] sm:$0xff]  ;;  %1089 = vst [vmem:[%s1342_s21 + $0x480] sm:$0xff] %v833_v51  ;;  %v581_v61 = vld [vmem:[%s1337_s18 + $0x4a0] sm:$0xff]  ;;  %v582_v63 = vld [vmem:[%s1337_s18 + $0x4a8] sm:$0xff] }
  0x84   : > { %v836_v60 = vadd.f32 %v580_v58, %v324_v57  ;;  %1090 = vst [vmem:[%s1342_s21 + $0x488] sm:$0xff] %v834_v55  ;;  %1091 = vst [vmem:[%s1342_s21 + $0x490] sm:$0xff] %v835_v56  ;;  %v837_v0 = vadd.f32 %v581_v61, %v325_v59  ;;  %v838_v1 = vadd.f32 %v582_v63, %v326_v62  ;;  %v327_v2 = vld [vmem:[%s1332_s15 + $0x4b0] sm:$0xff]  ;;  %v328_v4 = vld [vmem:[%s1332_s15 + $0x4b8] sm:$0xff] }
  0x85   : > { %v583_v3 = vld [vmem:[%s1337_s18 + $0x4b0] sm:$0xff]  ;;  %v584_v6 = vld [vmem:[%s1337_s18 + $0x4b8] sm:$0xff]  ;;  %v329_v7 = vld [vmem:[%s1332_s15 + $0x4c0] sm:$0xff] }
  0x86   : > { %1092 = vst [vmem:[%s1342_s21 + $0x498] sm:$0xff] %v836_v60  ;;  %v839_v5 = vadd.f32 %v583_v3, %v327_v2  ;;  %v585_v8 = vld [vmem:[%s1337_s18 + $0x4c0] sm:$0xff]  ;;  %1093 = vst [vmem:[%s1342_s21 + $0x4a0] sm:$0xff] %v837_v0  ;;  %v840_v9 = vadd.f32 %v584_v6, %v328_v4  ;;  %v330_v11 = vld [vmem:[%s1332_s15 + $0x4c8] sm:$0xff] }
  0x87   : > { %1094 = vst [vmem:[%s1342_s21 + $0x4a8] sm:$0xff] %v838_v1  ;;  %v841_v10 = vadd.f32 %v585_v8, %v329_v7  ;;  %v586_v12 = vld [vmem:[%s1337_s18 + $0x4c8] sm:$0xff]  ;;  %v331_v13 = vld [vmem:[%s1332_s15 + $0x4d0] sm:$0xff]  ;;  %v332_v16 = vld [vmem:[%s1332_s15 + $0x4d8] sm:$0xff] }
  0x88   : > { %1095 = vst [vmem:[%s1342_s21 + $0x4b0] sm:$0xff] %v839_v5  ;;  %v842_v14 = vadd.f32 %v586_v12, %v330_v11  ;;  %v587_v15 = vld [vmem:[%s1337_s18 + $0x4d0] sm:$0xff]  ;;  %v588_v17 = vld [vmem:[%s1337_s18 + $0x4d8] sm:$0xff]  ;;  %1096 = vst [vmem:[%s1342_s21 + $0x4b8] sm:$0xff] %v840_v9 }
  0x89   : > { %1097 = vst [vmem:[%s1342_s21 + $0x4c0] sm:$0xff] %v841_v10  ;;  %v843_v18 = vadd.f32 %v587_v15, %v331_v13  ;;  %v844_v19 = vadd.f32 %v588_v17, %v332_v16  ;;  %v333_v20 = vld [vmem:[%s1332_s15 + $0x4e0] sm:$0xff]  ;;  %v334_v22 = vld [vmem:[%s1332_s15 + $0x4e8] sm:$0xff]  ;;  %v335_v25 = vld [vmem:[%s1332_s15 + $0x4f0] sm:$0xff] }
  0x8a   : > { %v589_v21 = vld [vmem:[%s1337_s18 + $0x4e0] sm:$0xff]  ;;  %1098 = vst [vmem:[%s1342_s21 + $0x4c8] sm:$0xff] %v842_v14  ;;  %v590_v24 = vld [vmem:[%s1337_s18 + $0x4e8] sm:$0xff]  ;;  %v591_v26 = vld [vmem:[%s1337_s18 + $0x4f0] sm:$0xff] }
  0x8b   : > { %v845_v23 = vadd.f32 %v589_v21, %v333_v20  ;;  %1099 = vst [vmem:[%s1342_s21 + $0x4d0] sm:$0xff] %v843_v18  ;;  %1100 = vst [vmem:[%s1342_s21 + $0x4d8] sm:$0xff] %v844_v19  ;;  %v846_v27 = vadd.f32 %v590_v24, %v334_v22  ;;  %v847_v28 = vadd.f32 %v591_v26, %v335_v25  ;;  %v336_v29 = vld [vmem:[%s1332_s15 + $0x4f8] sm:$0xff]  ;;  %v337_v31 = vld [vmem:[%s1332_s15 + $0x500] sm:$0xff] }
  0x8c   : > { %v592_v30 = vld [vmem:[%s1337_s18 + $0x4f8] sm:$0xff]  ;;  %v593_v33 = vld [vmem:[%s1337_s18 + $0x500] sm:$0xff]  ;;  %v338_v34 = vld [vmem:[%s1332_s15 + $0x508] sm:$0xff] }
  0x8d   : > { %1101 = vst [vmem:[%s1342_s21 + $0x4e0] sm:$0xff] %v845_v23  ;;  %v848_v32 = vadd.f32 %v592_v30, %v336_v29  ;;  %v594_v35 = vld [vmem:[%s1337_s18 + $0x508] sm:$0xff]  ;;  %1102 = vst [vmem:[%s1342_s21 + $0x4e8] sm:$0xff] %v846_v27  ;;  %v849_v36 = vadd.f32 %v593_v33, %v337_v31  ;;  %v339_v38 = vld [vmem:[%s1332_s15 + $0x510] sm:$0xff] }
  0x8e   : > { %1103 = vst [vmem:[%s1342_s21 + $0x4f0] sm:$0xff] %v847_v28  ;;  %v850_v37 = vadd.f32 %v594_v35, %v338_v34  ;;  %v595_v39 = vld [vmem:[%s1337_s18 + $0x510] sm:$0xff]  ;;  %v340_v40 = vld [vmem:[%s1332_s15 + $0x518] sm:$0xff]  ;;  %v341_v43 = vld [vmem:[%s1332_s15 + $0x520] sm:$0xff] }
  0x8f   : > { %1104 = vst [vmem:[%s1342_s21 + $0x4f8] sm:$0xff] %v848_v32  ;;  %v851_v41 = vadd.f32 %v595_v39, %v339_v38  ;;  %v596_v42 = vld [vmem:[%s1337_s18 + $0x518] sm:$0xff]  ;;  %v597_v44 = vld [vmem:[%s1337_s18 + $0x520] sm:$0xff]  ;;  %1105 = vst [vmem:[%s1342_s21 + $0x500] sm:$0xff] %v849_v36 }
  0x90   : > { %1106 = vst [vmem:[%s1342_s21 + $0x508] sm:$0xff] %v850_v37  ;;  %v852_v45 = vadd.f32 %v596_v42, %v340_v40  ;;  %v853_v46 = vadd.f32 %v597_v44, %v341_v43  ;;  %v342_v47 = vld [vmem:[%s1332_s15 + $0x528] sm:$0xff]  ;;  %v343_v49 = vld [vmem:[%s1332_s15 + $0x530] sm:$0xff]  ;;  %v344_v52 = vld [vmem:[%s1332_s15 + $0x538] sm:$0xff] }
  0x91   : > { %v598_v48 = vld [vmem:[%s1337_s18 + $0x528] sm:$0xff]  ;;  %1107 = vst [vmem:[%s1342_s21 + $0x510] sm:$0xff] %v851_v41  ;;  %v599_v51 = vld [vmem:[%s1337_s18 + $0x530] sm:$0xff]  ;;  %v600_v53 = vld [vmem:[%s1337_s18 + $0x538] sm:$0xff] }
  0x92   : > { %v854_v50 = vadd.f32 %v598_v48, %v342_v47  ;;  %1108 = vst [vmem:[%s1342_s21 + $0x518] sm:$0xff] %v852_v45  ;;  %1109 = vst [vmem:[%s1342_s21 + $0x520] sm:$0xff] %v853_v46  ;;  %v855_v54 = vadd.f32 %v599_v51, %v343_v49  ;;  %v856_v55 = vadd.f32 %v600_v53, %v344_v52  ;;  %v345_v56 = vld [vmem:[%s1332_s15 + $0x540] sm:$0xff]  ;;  %v346_v58 = vld [vmem:[%s1332_s15 + $0x548] sm:$0xff] }
  0x93   : > { %v601_v57 = vld [vmem:[%s1337_s18 + $0x540] sm:$0xff]  ;;  %v602_v60 = vld [vmem:[%s1337_s18 + $0x548] sm:$0xff]  ;;  %v347_v61 = vld [vmem:[%s1332_s15 + $0x550] sm:$0xff] }
  0x94   : > { %1110 = vst [vmem:[%s1342_s21 + $0x528] sm:$0xff] %v854_v50  ;;  %v857_v59 = vadd.f32 %v601_v57, %v345_v56  ;;  %v603_v62 = vld [vmem:[%s1337_s18 + $0x550] sm:$0xff]  ;;  %1111 = vst [vmem:[%s1342_s21 + $0x530] sm:$0xff] %v855_v54  ;;  %v858_v63 = vadd.f32 %v602_v60, %v346_v58  ;;  %v348_v1 = vld [vmem:[%s1332_s15 + $0x558] sm:$0xff] }
  0x95   : > { %1112 = vst [vmem:[%s1342_s21 + $0x538] sm:$0xff] %v856_v55  ;;  %v859_v0 = vadd.f32 %v603_v62, %v347_v61  ;;  %v604_v2 = vld [vmem:[%s1337_s18 + $0x558] sm:$0xff]  ;;  %v349_v3 = vld [vmem:[%s1332_s15 + $0x560] sm:$0xff]  ;;  %v350_v6 = vld [vmem:[%s1332_s15 + $0x568] sm:$0xff] }
  0x96   : > { %1113 = vst [vmem:[%s1342_s21 + $0x540] sm:$0xff] %v857_v59  ;;  %v860_v4 = vadd.f32 %v604_v2, %v348_v1  ;;  %v605_v5 = vld [vmem:[%s1337_s18 + $0x560] sm:$0xff]  ;;  %v606_v7 = vld [vmem:[%s1337_s18 + $0x568] sm:$0xff]  ;;  %1114 = vst [vmem:[%s1342_s21 + $0x548] sm:$0xff] %v858_v63 }
  0x97   : > { %1115 = vst [vmem:[%s1342_s21 + $0x550] sm:$0xff] %v859_v0  ;;  %v861_v8 = vadd.f32 %v605_v5, %v349_v3  ;;  %v862_v9 = vadd.f32 %v606_v7, %v350_v6  ;;  %v351_v10 = vld [vmem:[%s1332_s15 + $0x570] sm:$0xff]  ;;  %v352_v12 = vld [vmem:[%s1332_s15 + $0x578] sm:$0xff]  ;;  %v353_v15 = vld [vmem:[%s1332_s15 + $0x580] sm:$0xff] }
  0x98   : > { %v607_v11 = vld [vmem:[%s1337_s18 + $0x570] sm:$0xff]  ;;  %1116 = vst [vmem:[%s1342_s21 + $0x558] sm:$0xff] %v860_v4  ;;  %v608_v14 = vld [vmem:[%s1337_s18 + $0x578] sm:$0xff]  ;;  %v609_v16 = vld [vmem:[%s1337_s18 + $0x580] sm:$0xff] }
  0x99   : > { %v863_v13 = vadd.f32 %v607_v11, %v351_v10  ;;  %1117 = vst [vmem:[%s1342_s21 + $0x560] sm:$0xff] %v861_v8  ;;  %1118 = vst [vmem:[%s1342_s21 + $0x568] sm:$0xff] %v862_v9  ;;  %v864_v17 = vadd.f32 %v608_v14, %v352_v12  ;;  %v865_v18 = vadd.f32 %v609_v16, %v353_v15  ;;  %v354_v19 = vld [vmem:[%s1332_s15 + $0x588] sm:$0xff]  ;;  %v355_v21 = vld [vmem:[%s1332_s15 + $0x590] sm:$0xff] }
  0x9a   : > { %v610_v20 = vld [vmem:[%s1337_s18 + $0x588] sm:$0xff]  ;;  %v611_v23 = vld [vmem:[%s1337_s18 + $0x590] sm:$0xff]  ;;  %v356_v24 = vld [vmem:[%s1332_s15 + $0x598] sm:$0xff] }
  0x9b   : > { %1119 = vst [vmem:[%s1342_s21 + $0x570] sm:$0xff] %v863_v13  ;;  %v866_v22 = vadd.f32 %v610_v20, %v354_v19  ;;  %v612_v25 = vld [vmem:[%s1337_s18 + $0x598] sm:$0xff]  ;;  %1120 = vst [vmem:[%s1342_s21 + $0x578] sm:$0xff] %v864_v17  ;;  %v867_v26 = vadd.f32 %v611_v23, %v355_v21  ;;  %v357_v28 = vld [vmem:[%s1332_s15 + $0x5a0] sm:$0xff] }
  0x9c   : > { %1121 = vst [vmem:[%s1342_s21 + $0x580] sm:$0xff] %v865_v18  ;;  %v868_v27 = vadd.f32 %v612_v25, %v356_v24  ;;  %v613_v29 = vld [vmem:[%s1337_s18 + $0x5a0] sm:$0xff]  ;;  %v358_v30 = vld [vmem:[%s1332_s15 + $0x5a8] sm:$0xff]  ;;  %v359_v33 = vld [vmem:[%s1332_s15 + $0x5b0] sm:$0xff] }
  0x9d   : > { %1122 = vst [vmem:[%s1342_s21 + $0x588] sm:$0xff] %v866_v22  ;;  %v869_v31 = vadd.f32 %v613_v29, %v357_v28  ;;  %v614_v32 = vld [vmem:[%s1337_s18 + $0x5a8] sm:$0xff]  ;;  %v615_v34 = vld [vmem:[%s1337_s18 + $0x5b0] sm:$0xff]  ;;  %1123 = vst [vmem:[%s1342_s21 + $0x590] sm:$0xff] %v867_v26 }
  0x9e   : > { %1124 = vst [vmem:[%s1342_s21 + $0x598] sm:$0xff] %v868_v27  ;;  %v870_v35 = vadd.f32 %v614_v32, %v358_v30  ;;  %v871_v36 = vadd.f32 %v615_v34, %v359_v33  ;;  %v360_v37 = vld [vmem:[%s1332_s15 + $0x5b8] sm:$0xff]  ;;  %v361_v39 = vld [vmem:[%s1332_s15 + $0x5c0] sm:$0xff]  ;;  %v362_v42 = vld [vmem:[%s1332_s15 + $0x5c8] sm:$0xff] }
  0x9f   : > { %v616_v38 = vld [vmem:[%s1337_s18 + $0x5b8] sm:$0xff]  ;;  %1125 = vst [vmem:[%s1342_s21 + $0x5a0] sm:$0xff] %v869_v31  ;;  %v617_v41 = vld [vmem:[%s1337_s18 + $0x5c0] sm:$0xff]  ;;  %v618_v43 = vld [vmem:[%s1337_s18 + $0x5c8] sm:$0xff] }
  0xa0   : > { %v872_v40 = vadd.f32 %v616_v38, %v360_v37  ;;  %1126 = vst [vmem:[%s1342_s21 + $0x5a8] sm:$0xff] %v870_v35  ;;  %1127 = vst [vmem:[%s1342_s21 + $0x5b0] sm:$0xff] %v871_v36  ;;  %v873_v44 = vadd.f32 %v617_v41, %v361_v39  ;;  %v874_v45 = vadd.f32 %v618_v43, %v362_v42  ;;  %v363_v46 = vld [vmem:[%s1332_s15 + $0x5d0] sm:$0xff]  ;;  %v364_v48 = vld [vmem:[%s1332_s15 + $0x5d8] sm:$0xff] }
  0xa1   : > { %v619_v47 = vld [vmem:[%s1337_s18 + $0x5d0] sm:$0xff]  ;;  %v620_v50 = vld [vmem:[%s1337_s18 + $0x5d8] sm:$0xff]  ;;  %v365_v51 = vld [vmem:[%s1332_s15 + $0x5e0] sm:$0xff] }
  0xa2   : > { %1128 = vst [vmem:[%s1342_s21 + $0x5b8] sm:$0xff] %v872_v40  ;;  %v875_v49 = vadd.f32 %v619_v47, %v363_v46  ;;  %v621_v52 = vld [vmem:[%s1337_s18 + $0x5e0] sm:$0xff]  ;;  %1129 = vst [vmem:[%s1342_s21 + $0x5c0] sm:$0xff] %v873_v44  ;;  %v876_v53 = vadd.f32 %v620_v50, %v364_v48  ;;  %v366_v55 = vld [vmem:[%s1332_s15 + $0x5e8] sm:$0xff] }
  0xa3   : > { %1130 = vst [vmem:[%s1342_s21 + $0x5c8] sm:$0xff] %v874_v45  ;;  %v877_v54 = vadd.f32 %v621_v52, %v365_v51  ;;  %v622_v56 = vld [vmem:[%s1337_s18 + $0x5e8] sm:$0xff]  ;;  %v367_v57 = vld [vmem:[%s1332_s15 + $0x5f0] sm:$0xff]  ;;  %v368_v60 = vld [vmem:[%s1332_s15 + $0x5f8] sm:$0xff] }
  0xa4   : > { %1131 = vst [vmem:[%s1342_s21 + $0x5d0] sm:$0xff] %v875_v49  ;;  %v878_v58 = vadd.f32 %v622_v56, %v366_v55  ;;  %v623_v59 = vld [vmem:[%s1337_s18 + $0x5f0] sm:$0xff]  ;;  %v624_v61 = vld [vmem:[%s1337_s18 + $0x5f8] sm:$0xff]  ;;  %1132 = vst [vmem:[%s1342_s21 + $0x5d8] sm:$0xff] %v876_v53 }
  0xa5   : > { %1133 = vst [vmem:[%s1342_s21 + $0x5e0] sm:$0xff] %v877_v54  ;;  %v879_v62 = vadd.f32 %v623_v59, %v367_v57  ;;  %v880_v63 = vadd.f32 %v624_v61, %v368_v60  ;;  %v369_v0 = vld [vmem:[%s1332_s15 + $0x600] sm:$0xff]  ;;  %v370_v2 = vld [vmem:[%s1332_s15 + $0x608] sm:$0xff]  ;;  %v371_v5 = vld [vmem:[%s1332_s15 + $0x610] sm:$0xff] }
  0xa6   : > { %v625_v1 = vld [vmem:[%s1337_s18 + $0x600] sm:$0xff]  ;;  %1134 = vst [vmem:[%s1342_s21 + $0x5e8] sm:$0xff] %v878_v58  ;;  %v626_v4 = vld [vmem:[%s1337_s18 + $0x608] sm:$0xff]  ;;  %v627_v6 = vld [vmem:[%s1337_s18 + $0x610] sm:$0xff] }
  0xa7   : > { %v881_v3 = vadd.f32 %v625_v1, %v369_v0  ;;  %1135 = vst [vmem:[%s1342_s21 + $0x5f0] sm:$0xff] %v879_v62  ;;  %1136 = vst [vmem:[%s1342_s21 + $0x5f8] sm:$0xff] %v880_v63  ;;  %v882_v7 = vadd.f32 %v626_v4, %v370_v2  ;;  %v883_v8 = vadd.f32 %v627_v6, %v371_v5  ;;  %v372_v9 = vld [vmem:[%s1332_s15 + $0x618] sm:$0xff]  ;;  %v373_v11 = vld [vmem:[%s1332_s15 + $0x620] sm:$0xff] }
  0xa8   : > { %v628_v10 = vld [vmem:[%s1337_s18 + $0x618] sm:$0xff]  ;;  %v629_v13 = vld [vmem:[%s1337_s18 + $0x620] sm:$0xff]  ;;  %v374_v14 = vld [vmem:[%s1332_s15 + $0x628] sm:$0xff] }
  0xa9   : > { %1137 = vst [vmem:[%s1342_s21 + $0x600] sm:$0xff] %v881_v3  ;;  %v884_v12 = vadd.f32 %v628_v10, %v372_v9  ;;  %v630_v15 = vld [vmem:[%s1337_s18 + $0x628] sm:$0xff]  ;;  %1138 = vst [vmem:[%s1342_s21 + $0x608] sm:$0xff] %v882_v7  ;;  %v885_v16 = vadd.f32 %v629_v13, %v373_v11  ;;  %v375_v18 = vld [vmem:[%s1332_s15 + $0x630] sm:$0xff] }
  0xaa   : > { %1139 = vst [vmem:[%s1342_s21 + $0x610] sm:$0xff] %v883_v8  ;;  %v886_v17 = vadd.f32 %v630_v15, %v374_v14  ;;  %v631_v19 = vld [vmem:[%s1337_s18 + $0x630] sm:$0xff]  ;;  %v376_v20 = vld [vmem:[%s1332_s15 + $0x638] sm:$0xff]  ;;  %v377_v23 = vld [vmem:[%s1332_s15 + $0x640] sm:$0xff] }
  0xab   : > { %1140 = vst [vmem:[%s1342_s21 + $0x618] sm:$0xff] %v884_v12  ;;  %v887_v21 = vadd.f32 %v631_v19, %v375_v18  ;;  %v632_v22 = vld [vmem:[%s1337_s18 + $0x638] sm:$0xff]  ;;  %v633_v24 = vld [vmem:[%s1337_s18 + $0x640] sm:$0xff]  ;;  %1141 = vst [vmem:[%s1342_s21 + $0x620] sm:$0xff] %v885_v16 }
  0xac   : > { %1142 = vst [vmem:[%s1342_s21 + $0x628] sm:$0xff] %v886_v17  ;;  %v888_v25 = vadd.f32 %v632_v22, %v376_v20  ;;  %v889_v26 = vadd.f32 %v633_v24, %v377_v23  ;;  %v378_v27 = vld [vmem:[%s1332_s15 + $0x648] sm:$0xff]  ;;  %v379_v29 = vld [vmem:[%s1332_s15 + $0x650] sm:$0xff]  ;;  %v380_v32 = vld [vmem:[%s1332_s15 + $0x658] sm:$0xff] }
  0xad   : > { %v634_v28 = vld [vmem:[%s1337_s18 + $0x648] sm:$0xff]  ;;  %1143 = vst [vmem:[%s1342_s21 + $0x630] sm:$0xff] %v887_v21  ;;  %v635_v31 = vld [vmem:[%s1337_s18 + $0x650] sm:$0xff]  ;;  %v636_v33 = vld [vmem:[%s1337_s18 + $0x658] sm:$0xff] }
  0xae   : > { %v890_v30 = vadd.f32 %v634_v28, %v378_v27  ;;  %1144 = vst [vmem:[%s1342_s21 + $0x638] sm:$0xff] %v888_v25  ;;  %1145 = vst [vmem:[%s1342_s21 + $0x640] sm:$0xff] %v889_v26  ;;  %v891_v34 = vadd.f32 %v635_v31, %v379_v29  ;;  %v892_v35 = vadd.f32 %v636_v33, %v380_v32  ;;  %v381_v36 = vld [vmem:[%s1332_s15 + $0x660] sm:$0xff]  ;;  %v382_v38 = vld [vmem:[%s1332_s15 + $0x668] sm:$0xff] }
  0xaf   : > { %v637_v37 = vld [vmem:[%s1337_s18 + $0x660] sm:$0xff]  ;;  %v638_v40 = vld [vmem:[%s1337_s18 + $0x668] sm:$0xff]  ;;  %v383_v41 = vld [vmem:[%s1332_s15 + $0x670] sm:$0xff] }
  0xb0   : > { %1146 = vst [vmem:[%s1342_s21 + $0x648] sm:$0xff] %v890_v30  ;;  %v893_v39 = vadd.f32 %v637_v37, %v381_v36  ;;  %v639_v42 = vld [vmem:[%s1337_s18 + $0x670] sm:$0xff]  ;;  %1147 = vst [vmem:[%s1342_s21 + $0x650] sm:$0xff] %v891_v34  ;;  %v894_v43 = vadd.f32 %v638_v40, %v382_v38  ;;  %v384_v45 = vld [vmem:[%s1332_s15 + $0x678] sm:$0xff] }
  0xb1   : > { %1148 = vst [vmem:[%s1342_s21 + $0x658] sm:$0xff] %v892_v35  ;;  %v895_v44 = vadd.f32 %v639_v42, %v383_v41  ;;  %v640_v46 = vld [vmem:[%s1337_s18 + $0x678] sm:$0xff]  ;;  %v385_v47 = vld [vmem:[%s1332_s15 + $0x680] sm:$0xff]  ;;  %v386_v50 = vld [vmem:[%s1332_s15 + $0x688] sm:$0xff] }
  0xb2   : > { %1149 = vst [vmem:[%s1342_s21 + $0x660] sm:$0xff] %v893_v39  ;;  %v896_v48 = vadd.f32 %v640_v46, %v384_v45  ;;  %v641_v49 = vld [vmem:[%s1337_s18 + $0x680] sm:$0xff]  ;;  %v642_v51 = vld [vmem:[%s1337_s18 + $0x688] sm:$0xff]  ;;  %1150 = vst [vmem:[%s1342_s21 + $0x668] sm:$0xff] %v894_v43 }
  0xb3   : > { %1151 = vst [vmem:[%s1342_s21 + $0x670] sm:$0xff] %v895_v44  ;;  %v897_v52 = vadd.f32 %v641_v49, %v385_v47  ;;  %v898_v53 = vadd.f32 %v642_v51, %v386_v50  ;;  %v387_v54 = vld [vmem:[%s1332_s15 + $0x690] sm:$0xff]  ;;  %v388_v56 = vld [vmem:[%s1332_s15 + $0x698] sm:$0xff]  ;;  %v389_v59 = vld [vmem:[%s1332_s15 + $0x6a0] sm:$0xff] }
  0xb4   : > { %v643_v55 = vld [vmem:[%s1337_s18 + $0x690] sm:$0xff]  ;;  %1152 = vst [vmem:[%s1342_s21 + $0x678] sm:$0xff] %v896_v48  ;;  %v644_v58 = vld [vmem:[%s1337_s18 + $0x698] sm:$0xff]  ;;  %v645_v60 = vld [vmem:[%s1337_s18 + $0x6a0] sm:$0xff] }
  0xb5   : > { %v899_v57 = vadd.f32 %v643_v55, %v387_v54  ;;  %1153 = vst [vmem:[%s1342_s21 + $0x680] sm:$0xff] %v897_v52  ;;  %1154 = vst [vmem:[%s1342_s21 + $0x688] sm:$0xff] %v898_v53  ;;  %v900_v61 = vadd.f32 %v644_v58, %v388_v56  ;;  %v901_v62 = vadd.f32 %v645_v60, %v389_v59  ;;  %v390_v63 = vld [vmem:[%s1332_s15 + $0x6a8] sm:$0xff]  ;;  %v391_v1 = vld [vmem:[%s1332_s15 + $0x6b0] sm:$0xff] }
  0xb6   : > { %v646_v0 = vld [vmem:[%s1337_s18 + $0x6a8] sm:$0xff]  ;;  %v647_v3 = vld [vmem:[%s1337_s18 + $0x6b0] sm:$0xff]  ;;  %v392_v4 = vld [vmem:[%s1332_s15 + $0x6b8] sm:$0xff] }
  0xb7   : > { %1155 = vst [vmem:[%s1342_s21 + $0x690] sm:$0xff] %v899_v57  ;;  %v902_v2 = vadd.f32 %v646_v0, %v390_v63  ;;  %v648_v5 = vld [vmem:[%s1337_s18 + $0x6b8] sm:$0xff]  ;;  %1156 = vst [vmem:[%s1342_s21 + $0x698] sm:$0xff] %v900_v61  ;;  %v903_v6 = vadd.f32 %v647_v3, %v391_v1  ;;  %v393_v8 = vld [vmem:[%s1332_s15 + $0x6c0] sm:$0xff] }
  0xb8   : > { %1157 = vst [vmem:[%s1342_s21 + $0x6a0] sm:$0xff] %v901_v62  ;;  %v904_v7 = vadd.f32 %v648_v5, %v392_v4  ;;  %v649_v9 = vld [vmem:[%s1337_s18 + $0x6c0] sm:$0xff]  ;;  %v394_v10 = vld [vmem:[%s1332_s15 + $0x6c8] sm:$0xff]  ;;  %v395_v13 = vld [vmem:[%s1332_s15 + $0x6d0] sm:$0xff] }
  0xb9   : > { %1158 = vst [vmem:[%s1342_s21 + $0x6a8] sm:$0xff] %v902_v2  ;;  %v905_v11 = vadd.f32 %v649_v9, %v393_v8  ;;  %v650_v12 = vld [vmem:[%s1337_s18 + $0x6c8] sm:$0xff]  ;;  %v651_v14 = vld [vmem:[%s1337_s18 + $0x6d0] sm:$0xff]  ;;  %1159 = vst [vmem:[%s1342_s21 + $0x6b0] sm:$0xff] %v903_v6 }
  0xba   : > { %1160 = vst [vmem:[%s1342_s21 + $0x6b8] sm:$0xff] %v904_v7  ;;  %v906_v15 = vadd.f32 %v650_v12, %v394_v10  ;;  %v907_v16 = vadd.f32 %v651_v14, %v395_v13  ;;  %v396_v17 = vld [vmem:[%s1332_s15 + $0x6d8] sm:$0xff]  ;;  %v397_v19 = vld [vmem:[%s1332_s15 + $0x6e0] sm:$0xff]  ;;  %v398_v22 = vld [vmem:[%s1332_s15 + $0x6e8] sm:$0xff] }
  0xbb   : > { %v652_v18 = vld [vmem:[%s1337_s18 + $0x6d8] sm:$0xff]  ;;  %1161 = vst [vmem:[%s1342_s21 + $0x6c0] sm:$0xff] %v905_v11  ;;  %v653_v21 = vld [vmem:[%s1337_s18 + $0x6e0] sm:$0xff]  ;;  %v654_v23 = vld [vmem:[%s1337_s18 + $0x6e8] sm:$0xff] }
  0xbc   : > { %v908_v20 = vadd.f32 %v652_v18, %v396_v17  ;;  %1162 = vst [vmem:[%s1342_s21 + $0x6c8] sm:$0xff] %v906_v15  ;;  %1163 = vst [vmem:[%s1342_s21 + $0x6d0] sm:$0xff] %v907_v16  ;;  %v909_v24 = vadd.f32 %v653_v21, %v397_v19  ;;  %v910_v25 = vadd.f32 %v654_v23, %v398_v22  ;;  %v399_v26 = vld [vmem:[%s1332_s15 + $0x6f0] sm:$0xff]  ;;  %v400_v28 = vld [vmem:[%s1332_s15 + $0x6f8] sm:$0xff] }
  0xbd   : > { %v655_v27 = vld [vmem:[%s1337_s18 + $0x6f0] sm:$0xff]  ;;  %v656_v30 = vld [vmem:[%s1337_s18 + $0x6f8] sm:$0xff]  ;;  %v401_v31 = vld [vmem:[%s1332_s15 + $0x700] sm:$0xff] }
  0xbe   : > { %1164 = vst [vmem:[%s1342_s21 + $0x6d8] sm:$0xff] %v908_v20  ;;  %v911_v29 = vadd.f32 %v655_v27, %v399_v26  ;;  %v657_v32 = vld [vmem:[%s1337_s18 + $0x700] sm:$0xff]  ;;  %1165 = vst [vmem:[%s1342_s21 + $0x6e0] sm:$0xff] %v909_v24  ;;  %v912_v33 = vadd.f32 %v656_v30, %v400_v28  ;;  %v402_v35 = vld [vmem:[%s1332_s15 + $0x708] sm:$0xff] }
  0xbf   : > { %1166 = vst [vmem:[%s1342_s21 + $0x6e8] sm:$0xff] %v910_v25  ;;  %v913_v34 = vadd.f32 %v657_v32, %v401_v31  ;;  %v658_v36 = vld [vmem:[%s1337_s18 + $0x708] sm:$0xff]  ;;  %v403_v37 = vld [vmem:[%s1332_s15 + $0x710] sm:$0xff]  ;;  %v404_v40 = vld [vmem:[%s1332_s15 + $0x718] sm:$0xff] }
  0xc0   : > { %1167 = vst [vmem:[%s1342_s21 + $0x6f0] sm:$0xff] %v911_v29  ;;  %v914_v38 = vadd.f32 %v658_v36, %v402_v35  ;;  %v659_v39 = vld [vmem:[%s1337_s18 + $0x710] sm:$0xff]  ;;  %v660_v41 = vld [vmem:[%s1337_s18 + $0x718] sm:$0xff]  ;;  %1168 = vst [vmem:[%s1342_s21 + $0x6f8] sm:$0xff] %v912_v33 }
  0xc1   : > { %1169 = vst [vmem:[%s1342_s21 + $0x700] sm:$0xff] %v913_v34  ;;  %v915_v42 = vadd.f32 %v659_v39, %v403_v37  ;;  %v916_v43 = vadd.f32 %v660_v41, %v404_v40  ;;  %v405_v44 = vld [vmem:[%s1332_s15 + $0x720] sm:$0xff]  ;;  %v406_v46 = vld [vmem:[%s1332_s15 + $0x728] sm:$0xff]  ;;  %v407_v49 = vld [vmem:[%s1332_s15 + $0x730] sm:$0xff] }
  0xc2   : > { %v661_v45 = vld [vmem:[%s1337_s18 + $0x720] sm:$0xff]  ;;  %1170 = vst [vmem:[%s1342_s21 + $0x708] sm:$0xff] %v914_v38  ;;  %v662_v48 = vld [vmem:[%s1337_s18 + $0x728] sm:$0xff]  ;;  %v663_v50 = vld [vmem:[%s1337_s18 + $0x730] sm:$0xff] }
  0xc3   : > { %v917_v47 = vadd.f32 %v661_v45, %v405_v44  ;;  %1171 = vst [vmem:[%s1342_s21 + $0x710] sm:$0xff] %v915_v42  ;;  %1172 = vst [vmem:[%s1342_s21 + $0x718] sm:$0xff] %v916_v43  ;;  %v918_v51 = vadd.f32 %v662_v48, %v406_v46  ;;  %v919_v52 = vadd.f32 %v663_v50, %v407_v49  ;;  %v408_v53 = vld [vmem:[%s1332_s15 + $0x738] sm:$0xff]  ;;  %v409_v55 = vld [vmem:[%s1332_s15 + $0x740] sm:$0xff] }
  0xc4   : > { %v664_v54 = vld [vmem:[%s1337_s18 + $0x738] sm:$0xff]  ;;  %v665_v57 = vld [vmem:[%s1337_s18 + $0x740] sm:$0xff]  ;;  %v410_v58 = vld [vmem:[%s1332_s15 + $0x748] sm:$0xff] }
  0xc5   : > { %1173 = vst [vmem:[%s1342_s21 + $0x720] sm:$0xff] %v917_v47  ;;  %v920_v56 = vadd.f32 %v664_v54, %v408_v53  ;;  %v666_v59 = vld [vmem:[%s1337_s18 + $0x748] sm:$0xff]  ;;  %1174 = vst [vmem:[%s1342_s21 + $0x728] sm:$0xff] %v918_v51  ;;  %v921_v60 = vadd.f32 %v665_v57, %v409_v55  ;;  %v411_v62 = vld [vmem:[%s1332_s15 + $0x750] sm:$0xff] }
  0xc6   : > { %1175 = vst [vmem:[%s1342_s21 + $0x730] sm:$0xff] %v919_v52  ;;  %v922_v61 = vadd.f32 %v666_v59, %v410_v58  ;;  %v667_v63 = vld [vmem:[%s1337_s18 + $0x750] sm:$0xff]  ;;  %v412_v0 = vld [vmem:[%s1332_s15 + $0x758] sm:$0xff]  ;;  %v413_v3 = vld [vmem:[%s1332_s15 + $0x760] sm:$0xff] }
  0xc7   : > { %1176 = vst [vmem:[%s1342_s21 + $0x738] sm:$0xff] %v920_v56  ;;  %v923_v1 = vadd.f32 %v667_v63, %v411_v62  ;;  %v668_v2 = vld [vmem:[%s1337_s18 + $0x758] sm:$0xff]  ;;  %v669_v4 = vld [vmem:[%s1337_s18 + $0x760] sm:$0xff]  ;;  %1177 = vst [vmem:[%s1342_s21 + $0x740] sm:$0xff] %v921_v60 }
  0xc8   : > { %1178 = vst [vmem:[%s1342_s21 + $0x748] sm:$0xff] %v922_v61  ;;  %v924_v5 = vadd.f32 %v668_v2, %v412_v0  ;;  %v925_v6 = vadd.f32 %v669_v4, %v413_v3  ;;  %v414_v7 = vld [vmem:[%s1332_s15 + $0x768] sm:$0xff]  ;;  %v415_v9 = vld [vmem:[%s1332_s15 + $0x770] sm:$0xff]  ;;  %v416_v12 = vld [vmem:[%s1332_s15 + $0x778] sm:$0xff] }
  0xc9   : > { %v670_v8 = vld [vmem:[%s1337_s18 + $0x768] sm:$0xff]  ;;  %1179 = vst [vmem:[%s1342_s21 + $0x750] sm:$0xff] %v923_v1  ;;  %v671_v11 = vld [vmem:[%s1337_s18 + $0x770] sm:$0xff]  ;;  %v672_v13 = vld [vmem:[%s1337_s18 + $0x778] sm:$0xff] }
  0xca   : > { %v926_v10 = vadd.f32 %v670_v8, %v414_v7  ;;  %1180 = vst [vmem:[%s1342_s21 + $0x758] sm:$0xff] %v924_v5  ;;  %1181 = vst [vmem:[%s1342_s21 + $0x760] sm:$0xff] %v925_v6  ;;  %v927_v14 = vadd.f32 %v671_v11, %v415_v9  ;;  %v928_v15 = vadd.f32 %v672_v13, %v416_v12  ;;  %v417_v16 = vld [vmem:[%s1332_s15 + $0x780] sm:$0xff]  ;;  %v418_v18 = vld [vmem:[%s1332_s15 + $0x788] sm:$0xff] }
  0xcb   : > { %v673_v17 = vld [vmem:[%s1337_s18 + $0x780] sm:$0xff]  ;;  %v674_v20 = vld [vmem:[%s1337_s18 + $0x788] sm:$0xff]  ;;  %v419_v21 = vld [vmem:[%s1332_s15 + $0x790] sm:$0xff] }
  0xcc   : > { %1182 = vst [vmem:[%s1342_s21 + $0x768] sm:$0xff] %v926_v10  ;;  %v929_v19 = vadd.f32 %v673_v17, %v417_v16  ;;  %v675_v22 = vld [vmem:[%s1337_s18 + $0x790] sm:$0xff]  ;;  %1183 = vst [vmem:[%s1342_s21 + $0x770] sm:$0xff] %v927_v14  ;;  %v930_v23 = vadd.f32 %v674_v20, %v418_v18  ;;  %v420_v25 = vld [vmem:[%s1332_s15 + $0x798] sm:$0xff] }
  0xcd   : > { %1184 = vst [vmem:[%s1342_s21 + $0x778] sm:$0xff] %v928_v15  ;;  %v931_v24 = vadd.f32 %v675_v22, %v419_v21  ;;  %v676_v26 = vld [vmem:[%s1337_s18 + $0x798] sm:$0xff]  ;;  %v421_v27 = vld [vmem:[%s1332_s15 + $0x7a0] sm:$0xff]  ;;  %v422_v30 = vld [vmem:[%s1332_s15 + $0x7a8] sm:$0xff] }
  0xce   : > { %1185 = vst [vmem:[%s1342_s21 + $0x780] sm:$0xff] %v929_v19  ;;  %v932_v28 = vadd.f32 %v676_v26, %v420_v25  ;;  %v677_v29 = vld [vmem:[%s1337_s18 + $0x7a0] sm:$0xff]  ;;  %v678_v31 = vld [vmem:[%s1337_s18 + $0x7a8] sm:$0xff]  ;;  %1186 = vst [vmem:[%s1342_s21 + $0x788] sm:$0xff] %v930_v23 }
  0xcf   : > { %1187 = vst [vmem:[%s1342_s21 + $0x790] sm:$0xff] %v931_v24  ;;  %v933_v32 = vadd.f32 %v677_v29, %v421_v27  ;;  %v934_v33 = vadd.f32 %v678_v31, %v422_v30  ;;  %v423_v34 = vld [vmem:[%s1332_s15 + $0x7b0] sm:$0xff]  ;;  %v424_v36 = vld [vmem:[%s1332_s15 + $0x7b8] sm:$0xff]  ;;  %v425_v39 = vld [vmem:[%s1332_s15 + $0x7c0] sm:$0xff] }
  0xd0   : > { %v679_v35 = vld [vmem:[%s1337_s18 + $0x7b0] sm:$0xff]  ;;  %1188 = vst [vmem:[%s1342_s21 + $0x798] sm:$0xff] %v932_v28  ;;  %v680_v38 = vld [vmem:[%s1337_s18 + $0x7b8] sm:$0xff]  ;;  %v681_v40 = vld [vmem:[%s1337_s18 + $0x7c0] sm:$0xff] }
  0xd1   : > { %v935_v37 = vadd.f32 %v679_v35, %v423_v34  ;;  %1189 = vst [vmem:[%s1342_s21 + $0x7a0] sm:$0xff] %v933_v32  ;;  %1190 = vst [vmem:[%s1342_s21 + $0x7a8] sm:$0xff] %v934_v33  ;;  %v936_v41 = vadd.f32 %v680_v38, %v424_v36  ;;  %v937_v42 = vadd.f32 %v681_v40, %v425_v39  ;;  %v426_v43 = vld [vmem:[%s1332_s15 + $0x7c8] sm:$0xff]  ;;  %v427_v45 = vld [vmem:[%s1332_s15 + $0x7d0] sm:$0xff] }
  0xd2   : > { %v682_v44 = vld [vmem:[%s1337_s18 + $0x7c8] sm:$0xff]  ;;  %v683_v47 = vld [vmem:[%s1337_s18 + $0x7d0] sm:$0xff]  ;;  %v428_v48 = vld [vmem:[%s1332_s15 + $0x7d8] sm:$0xff] }
  0xd3   : > { %1191 = vst [vmem:[%s1342_s21 + $0x7b0] sm:$0xff] %v935_v37  ;;  %v938_v46 = vadd.f32 %v682_v44, %v426_v43  ;;  %v684_v49 = vld [vmem:[%s1337_s18 + $0x7d8] sm:$0xff]  ;;  %1192 = vst [vmem:[%s1342_s21 + $0x7b8] sm:$0xff] %v936_v41  ;;  %v939_v50 = vadd.f32 %v683_v47, %v427_v45  ;;  %v429_v52 = vld [vmem:[%s1332_s15 + $0x7e0] sm:$0xff] }
  0xd4   : > { %1193 = vst [vmem:[%s1342_s21 + $0x7c0] sm:$0xff] %v937_v42  ;;  %v940_v51 = vadd.f32 %v684_v49, %v428_v48  ;;  %v685_v53 = vld [vmem:[%s1337_s18 + $0x7e0] sm:$0xff]  ;;  %v430_v54 = vld [vmem:[%s1332_s15 + $0x7e8] sm:$0xff]  ;;  %v431_v57 = vld [vmem:[%s1332_s15 + $0x7f0] sm:$0xff] }
  0xd5   : > { %1194 = vst [vmem:[%s1342_s21 + $0x7c8] sm:$0xff] %v938_v46  ;;  %v941_v55 = vadd.f32 %v685_v53, %v429_v52  ;;  %v686_v56 = vld [vmem:[%s1337_s18 + $0x7e8] sm:$0xff]  ;;  %v687_v58 = vld [vmem:[%s1337_s18 + $0x7f0] sm:$0xff]  ;;  %1195 = vst [vmem:[%s1342_s21 + $0x7d0] sm:$0xff] %v939_v50 }
  0xd6   : > { %1196 = vst [vmem:[%s1342_s21 + $0x7d8] sm:$0xff] %v940_v51  ;;  %v942_v59 = vadd.f32 %v686_v56, %v430_v54  ;;  %v943_v60 = vadd.f32 %v687_v58, %v431_v57  ;;  %v432_v61 = vld [vmem:[%s1332_s15 + $0x7f8] sm:$0xff] }
  0xd7   : > { %v688_v62 = vld [vmem:[%s1337_s18 + $0x7f8] sm:$0xff]  ;;  %1197 = vst [vmem:[%s1342_s21 + $0x7e0] sm:$0xff] %v941_v55 }
  0xd8   : > { %v944_v63 = vadd.f32 %v688_v62, %v432_v61  ;;  %1198 = vst [vmem:[%s1342_s21 + $0x7e8] sm:$0xff] %v942_v59  ;;  %1199 = vst [vmem:[%s1342_s21 + $0x7f0] sm:$0xff] %v943_v60 }
  0xda   : > { %1200 = vst [vmem:[%s1342_s21 + $0x7f8] sm:$0xff] %v944_v63 }
  0xdb PF: > { %s12_s9 = sadd.s32 1, %s1304_s9  }
  0xdc   : > { %p9_p4 = scmp.ge.s32.totalorder %s12_s9, 4  }
  0xde   :  { %11 = sbr.rel (!%p9_p4) target bundleno = 1 (0x1), region = 61 }

</bundles_post_ra>
